<compile_context>
chip_gen: v5e
topology: v5e:2x2
jax: 0.10.0
libtpu: 0.0.40
codegen_flags: <defaults>
</compile_context>

<pallas_src>
import numpy as np
import jax
import jax.numpy as jnp
from jax import lax
from jax.experimental import pallas as pl
from jax.experimental.pallas import tpu as pltpu

_INV_SQRT2 = 0.7071067811865476  # 1/sqrt(2) as a Python float constant


def _gelu(x):
    # exact-erf GELU, matching torch.nn.GELU() default
    return 0.5 * x * (1.0 + lax.erf(x * _INV_SQRT2))


# --------------------------------------------------------------------------
# Kernel: z1 = gelu(h @ T1); z2 = gelu(z1 @ T2); out = z2 @ Avg
# --------------------------------------------------------------------------
def hist_encoder_kernel(h_ref, t1_ref, t2_ref, avg_ref, out_ref):
    h = h_ref[...]                                                          # (TB, S)
    a1 = _gelu(jnp.dot(h, t1_ref[...],
                       preferred_element_type=jnp.float32))                 # (TB, H*S)
    a2 = _gelu(jnp.dot(a1, t2_ref[...],
                       preferred_element_type=jnp.float32))                 # (TB, H*S)
    out_ref[...] = jnp.dot(a2, avg_ref[...],
                           preferred_element_type=jnp.float32)              # (TB, H)


# --------------------------------------------------------------------------
# Wrapper-side precomputation (runs once, outside the hot loop)
# --------------------------------------------------------------------------
def make_dft_bases(S, M):
    """Real/imag rfft analysis bases and irfft synthesis bases (c_k/S folded in)."""
    assert M <= S // 2 + 1, "n_modes must not exceed S//2 + 1"
    k = np.arange(M)[:, None]
    s = np.arange(S)[None, :]
    ang = 2.0 * np.pi * k * s / S
    Fr = np.cos(ang).astype(np.float32)                                     # (M, S)
    Fi = (-np.sin(ang)).astype(np.float32)                                  # (M, S)
    ck = np.where((np.arange(M) == 0) | (np.arange(M) == S // 2), 1.0, 2.0)
    ang2 = 2.0 * np.pi * np.arange(S)[:, None] * np.arange(M)[None, :] / S
    Cr = ((ck[None, :] / S) * np.cos(ang2)).astype(np.float32)              # (S, M)
    Ci = (-(ck[None, :] / S) * np.sin(ang2)).astype(np.float32)             # (S, M)
    return Fr, Fi, Cr, Ci


def fold_layer1(w1r, w1i, Fr, Fi, Cr, Ci):
    """T1[s, o, p] such that z1[b,o,p] = sum_s h[b,s] * T1[s,o,p]."""
    # coefficient of Xr / Xi in z1 (see complex mixing algebra)
    Gr = jnp.einsum('pk,ok->okp', Cr, w1r) + jnp.einsum('pk,ok->okp', Ci, w1i)
    Gi = jnp.einsum('pk,ok->okp', Ci, w1r) - jnp.einsum('pk,ok->okp', Cr, w1i)
    T1 = jnp.einsum('ks,okp->sop', Fr, Gr) + jnp.einsum('ks,okp->sop', Fi, Gi)
    S = Fr.shape[1]
    H = w1r.shape[0]
    return T1.reshape(S, H * S)


def fold_layer2(w2r, w2i, Fr, Fi, Cr, Ci):
    """T2[(i,s),(o,p)] such that z2[b,o,p] = sum_{i,s} a1[b,i,s] * T2[i,s,o,p]."""
    Gr = jnp.einsum('pk,iok->iokp', Cr, w2r) + jnp.einsum('pk,iok->iokp', Ci, w2i)
    Gi = jnp.einsum('pk,iok->iokp', Ci, w2r) - jnp.einsum('pk,iok->iokp', Cr, w2i)
    T2 = jnp.einsum('ks,iokp->isop', Fr, Gr) + jnp.einsum('ks,iokp->isop', Fi, Gi)
    Hin, Hout, _ = w2r.shape
    S = Fr.shape[1]
    return T2.reshape(Hin * S, Hout * S)


def make_avg_matrix(H, S):
    """(H*S, H) block-averaging matrix: out[b,o] = mean_p a2[b, o*S + p]."""
    return np.kron(np.eye(H, dtype=np.float32),
                   np.full((S, 1), 1.0 / S, dtype=np.float32))


def _vmem_capacity_bytes():
    try:
        return pltpu.get_tpu_info().vmem_capacity_bytes
    except Exception:
        return 64 * 1024 * 1024  # conservative (v7x per-TC)


def _pick_batch_tile(B, S, H):
    """Generation-aware batch tile: bigger on 128 MiB parts, bounded on v7x."""
    HS = H * S
    vmem = _vmem_capacity_bytes()
    resident = 2 * 4 * (S * HS + HS * HS + HS * H)       # double-buffered weight tiles
    budget = int(0.6 * vmem) - resident
    tb = max(8, budget // (6 * HS * 4))                  # ~6 live (TB, H*S) f32 slabs
    tb = min(tb, 2048)                                   # keeps v7x (64 MiB) safe
    tb = (tb // 8) * 8                                   # sublane multiple of 8
    if B <= tb:
        return B, 1
    return tb, pl.cdiv(B, tb)


# --------------------------------------------------------------------------
# Public entry point
# --------------------------------------------------------------------------
def hist_encoder_fno(h, w1, w2):
    """
    h  : (B, 1, S) f32
    w1 : (1, H, M) complex64   (first spectral conv weights)
    w2 : (H, H, M) complex64   (second spectral conv weights)
    returns (B, H) f32
    """
    B, Cin, S = h.shape
    assert Cin == 1
    H, M = w1.shape[1], w1.shape[2]
    HS = H * S

    Fr, Fi, Cr, Ci = (jnp.asarray(a) for a in make_dft_bases(S, M))

    w1r = jnp.real(w1)[0].astype(jnp.float32)            # (H, M)
    w1i = jnp.imag(w1)[0].astype(jnp.float32)
    w2r = jnp.real(w2).astype(jnp.float32)               # (H, H, M)
    w2i = jnp.imag(w2).astype(jnp.float32)

    T1 = fold_layer1(w1r, w1i, Fr, Fi, Cr, Ci)           # (S,   H*S)
    T2 = fold_layer2(w2r, w2i, Fr, Fi, Cr, Ci)           # (H*S, H*S)
    Avg = jnp.asarray(make_avg_matrix(H, S))             # (H*S, H)

    h2d = h[:, 0, :].astype(jnp.float32)                 # (B, S)

    TB, n_blocks = _pick_batch_tile(B, S, H)
    vmem = _vmem_capacity_bytes()

    cost = pl.CostEstimate(
        flops=2 * B * (S * HS + HS * HS + HS * H),
        transcendentals=2 * B * HS,
        bytes_accessed=4 * (B * S + S * HS + HS * HS + HS * H + B * H),
    )

    grid_spec = pltpu.PrefetchScalarGridSpec(
        num_scalar_prefetch=0,
        grid=(n_blocks,),
        in_specs=[
            pl.BlockSpec((TB, S), lambda i: (i, 0)),     # batch tile of h
            pl.BlockSpec((S, HS), lambda i: (0, 0)),     # T1, resident
            pl.BlockSpec((HS, HS), lambda i: (0, 0)),    # T2, resident
            pl.BlockSpec((HS, H), lambda i: (0, 0)),     # Avg, resident
        ],
        out_specs=pl.BlockSpec((TB, H), lambda i: (i, 0)),
    )

    out = pl.pallas_call(
        hist_encoder_kernel,
        out_shape=jax.ShapeDtypeStruct((B, H), jnp.float32),
        grid_spec=grid_spec,
        compiler_params=pltpu.CompilerParams(
            dimension_semantics=("parallel",),           # shards batch across v7x TCs
            vmem_limit_bytes=int(vmem * 3 // 4),
        ),
        cost_estimate=cost,
    )(h2d, T1, T2, Avg)
    return out


# --------------------------------------------------------------------------
# Pure-JAX reference (mirrors the PyTorch module with rfft/irfft)
# --------------------------------------------------------------------------
def reference_fno(h, w1, w2):
    def spectral(x, w):
        M = w.shape[-1]
        xf = jnp.fft.rfft(x, axis=-1)
        yf = jnp.einsum('bim,iom->bom', xf[..., :M], w)
        out_f = jnp.zeros(x.shape[:1] + (w.shape[1], x.shape[-1] // 2 + 1),
                          dtype=yf.dtype)
        out_f = out_f.at[..., :M].set(yf)
        return jnp.fft.irfft(out_f, n=x.shape[-1], axis=-1)

    def gelu(x):
        return 0.5 * x * (1.0 + jax.scipy.special.erf(x * _INV_SQRT2))

    z = gelu(spectral(h, w1))
    z = gelu(spectral(z, w2))
    return z.mean(-1)


if __name__ == "__main__":
    # small, module-consistent shapes (S=16, n_modes=4 are the module defaults)
    B, S, M, H = 2, 16, 4, 32

    key = jax.random.PRNGKey(0)
    k_h, k1r, k1i, k2r, k2i = jax.random.split(key, 5)

    h = jax.random.normal(k_h, (B, 1, S), dtype=jnp.float32)

    # SpectralConv init: scale * rand(in, out, modes) complex, scale = 1/(in*out)
    s1 = 1.0 / (1 * H)
    s2 = 1.0 / (H * H)
    w1 = (s1 * jax.random.uniform(k1r, (1, H, M))
          + 1j * s1 * jax.random.uniform(k1i, (1, H, M))).astype(jnp.complex64)
    w2 = (s2 * jax.random.uniform(k2r, (H, H, M))
          + 1j * s2 * jax.random.uniform(k2i, (H, H, M))).astype(jnp.complex64)

    out = hist_encoder_fno(h, w1, w2)
    out = jax.block_until_ready(out)
    assert out.shape == (B, H)

    ref = jax.block_until_ready(reference_fno(h, w1, w2))
    np.testing.assert_allclose(np.asarray(out), np.asarray(ref),
                               rtol=1e-4, atol=1e-4)

    print("KERNEL_OK")
</pallas_src>

<mosaic_0001>
module attributes {stable_mosaic.version = 11 : i64} {
  func.func @hist_encoder_kernel(%arg0: i32, %arg1: memref<2x16xf32, #tpu.memory_space<vmem>>, %arg2: memref<16x512xf32, #tpu.memory_space<vmem>>, %arg3: memref<512x512xf32, #tpu.memory_space<vmem>>, %arg4: memref<512x32xf32, #tpu.memory_space<vmem>>, %arg5: memref<2x32xf32, #tpu.memory_space<vmem>>) attributes {dimension_semantics = [#tpu.dimension_semantics<parallel>], iteration_bounds = array<i64: 1>, scalar_prefetch = 0 : i64, scratch_operands = 0 : i64, tpu.core_type = #tpu.core_type<tc>, window_params = [{transform_indices = @transform_0, window_bounds = array<i64: 2, 16>}, {pipeline_mode = #tpu.pipeline_mode<synchronous>, transform_indices = @transform_1, window_bounds = array<i64: 16, 512>}, {pipeline_mode = #tpu.pipeline_mode<synchronous>, transform_indices = @transform_2, window_bounds = array<i64: 512, 512>}, {pipeline_mode = #tpu.pipeline_mode<synchronous>, transform_indices = @transform_3, window_bounds = array<i64: 512, 32>}, {transform_indices = @transform_4, window_bounds = array<i64: 2, 32>}]} {
    %c0 = arith.constant 0 : index
    %c0_0 = arith.constant 0 : index
    %0 = vector.load %arg1[%c0, %c0_0] : memref<2x16xf32, #tpu.memory_space<vmem>>, vector<2x16xf32>
    %c0_1 = arith.constant 0 : index
    %c0_2 = arith.constant 0 : index
    %1 = vector.load %arg2[%c0_1, %c0_2] : memref<16x512xf32, #tpu.memory_space<vmem>>, vector<16x512xf32>
    %cst = arith.constant dense<0.000000e+00> : vector<2x512xf32>
    %2 = tpu.matmul %0, %1, %cst {dimension_numbers = #tpu.dot_dimension_numbers<[1], [0], [0], [1], [0, 0, 1, 1], [], []>} : vector<2x16xf32>, vector<16x512xf32>, vector<2x512xf32> -> vector<2x512xf32>
    %cst_3 = arith.constant 5.000000e-01 : f32
    %3 = vector.broadcast %cst_3 : f32 to vector<2x512xf32>
    %4 = arith.mulf %3, %2 : vector<2x512xf32>
    %cst_4 = arith.constant 0.707106769 : f32
    %5 = vector.broadcast %cst_4 : f32 to vector<2x512xf32>
    %6 = arith.mulf %2, %5 : vector<2x512xf32>
    %7 = math.erf %6 : vector<2x512xf32>
    %cst_5 = arith.constant 1.000000e+00 : f32
    %8 = vector.broadcast %cst_5 : f32 to vector<2x512xf32>
    %9 = arith.addf %8, %7 : vector<2x512xf32>
    %10 = arith.mulf %4, %9 : vector<2x512xf32>
    %c0_6 = arith.constant 0 : index
    %c0_7 = arith.constant 0 : index
    %11 = vector.load %arg3[%c0_6, %c0_7] : memref<512x512xf32, #tpu.memory_space<vmem>>, vector<512x512xf32>
    %cst_8 = arith.constant dense<0.000000e+00> : vector<2x512xf32>
    %12 = tpu.matmul %10, %11, %cst_8 {dimension_numbers = #tpu.dot_dimension_numbers<[1], [0], [0], [1], [0, 0, 1, 1], [], []>} : vector<2x512xf32>, vector<512x512xf32>, vector<2x512xf32> -> vector<2x512xf32>
    %cst_9 = arith.constant 5.000000e-01 : f32
    %13 = vector.broadcast %cst_9 : f32 to vector<2x512xf32>
    %14 = arith.mulf %13, %12 : vector<2x512xf32>
    %cst_10 = arith.constant 0.707106769 : f32
    %15 = vector.broadcast %cst_10 : f32 to vector<2x512xf32>
    %16 = arith.mulf %12, %15 : vector<2x512xf32>
    %17 = math.erf %16 : vector<2x512xf32>
    %cst_11 = arith.constant 1.000000e+00 : f32
    %18 = vector.broadcast %cst_11 : f32 to vector<2x512xf32>
    %19 = arith.addf %18, %17 : vector<2x512xf32>
    %20 = arith.mulf %14, %19 : vector<2x512xf32>
    %c0_12 = arith.constant 0 : index
    %c0_13 = arith.constant 0 : index
    %21 = vector.load %arg4[%c0_12, %c0_13] : memref<512x32xf32, #tpu.memory_space<vmem>>, vector<512x32xf32>
    %cst_14 = arith.constant dense<0.000000e+00> : vector<2x32xf32>
    %22 = tpu.matmul %20, %21, %cst_14 {dimension_numbers = #tpu.dot_dimension_numbers<[1], [0], [0], [1], [0, 0, 1, 1], [], []>} : vector<2x512xf32>, vector<512x32xf32>, vector<2x32xf32> -> vector<2x32xf32>
    %c0_15 = arith.constant 0 : index
    %c0_16 = arith.constant 0 : index
    %23 = vector.load %arg5[%c0_15, %c0_16] : memref<2x32xf32, #tpu.memory_space<vmem>>, vector<2x32xf32>
    tpu.vector_store %arg5[%c0_15, %c0_16], %22 {strides = array<i32>} : memref<2x32xf32, #tpu.memory_space<vmem>>, vector<2x32xf32>,
    return
  }
  func.func @transform_0(%arg0: i32) -> (i32, i32) {
    %c0_i32 = arith.constant 0 : i32
    %c0_i32_0 = arith.constant 0 : i32
    return %arg0, %c0_i32 : i32, i32
  }
  func.func @transform_1(%arg0: i32) -> (i32, i32) {
    %c0_i32 = arith.constant 0 : i32
    %c0_i32_0 = arith.constant 0 : i32
    %c0_i32_1 = arith.constant 0 : i32
    return %c0_i32, %c0_i32_0 : i32, i32
  }
  func.func @transform_2(%arg0: i32) -> (i32, i32) {
    %c0_i32 = arith.constant 0 : i32
    %c0_i32_0 = arith.constant 0 : i32
    %c0_i32_1 = arith.constant 0 : i32
    return %c0_i32, %c0_i32_0 : i32, i32
  }
  func.func @transform_3(%arg0: i32) -> (i32, i32) {
    %c0_i32 = arith.constant 0 : i32
    %c0_i32_0 = arith.constant 0 : i32
    %c0_i32_1 = arith.constant 0 : i32
    return %c0_i32, %c0_i32_0 : i32, i32
  }
  func.func @transform_4(%arg0: i32) -> (i32, i32) {
    %c0_i32 = arith.constant 0 : i32
    %c0_i32_0 = arith.constant 0 : i32
    return %arg0, %c0_i32 : i32, i32
  }
}

</mosaic_0001>

<bundles_post_ra>
// kernel: tpu_custom_call.1
= control target key start
LH: loop header
LB: loop body
LE: loop exit
PB: predicated region body
PF: predicated region fallthrough
CT: control target
= control target key end

     0   :  { %9 = vsyncpa [#allocation3], 0  ;;  %s1802_s0 = inlined_call_operand.vmem [shape: f32[2,16], index: 0, kind: input, shape index: {}]   ;;  %s1803_s1 = inlined_call_operand.vmem [shape: f32[16,512], index: 1, kind: input, shape index: {}]   ;;  %s1804_s2 = inlined_call_operand.hbm [shape: f32[512,512], index: 2, kind: input, shape index: {}]   ;;  %s1805_s3 = inlined_call_operand.vmem [shape: f32[512,32], index: 3, kind: input, shape index: {}]   ;;  %s1806_s4 = inlined_call_operand.hbm [shape: f32[2,32], index: 4, kind: output, shape index: {}]  }
   0x1   :  { %10 = vsyncpa [#allocation4], 0  ;;  %s19_s17 = sshll.u32 %s1804_s2, 4  ;;  %s1302_s18 = smov [#allocation2]   ;;  %s20_s17 = int_to_ptr.hbm [resolvable:$true] %s19_s17 }
   0x2   :  { %s21_s19 = sshll.u32 %s1302_s18, 4  ;;  %s1303_s20 = smov 512   ;;  %s22_s19 = int_to_ptr.vmem [resolvable:$true] %s21_s19 }
   0x3   :  { %s1304_s21 = smov 32  }
   0x4   :  { %27 = dma.hbm_to_vmem [thread:$0]  %s20_s17, 32768, %s22_s19, [#allocation3], %s1303_s20, %s1303_s20, %s1304_s21  }
   0x5   :  { %1298 = dma.done.wait [#allocation3], 32768  }
   0x6   :  { %1299 = vsyncadd [#allocation3], 4294934528  ;;  %v39_v0 = vld [vmem:[%s1803_s1 + $0x20] sm:$0xff]  ;;  %v40_v1 = vld [vmem:[%s1803_s1 + $0x28] sm:$0xff]  ;;  %vm43_vm0 = vcmask 130048   ;;  %s1208_s26 = sshll.u32 %s1806_s4, 4  ;;  %s1209_s26 = int_to_ptr.hbm [resolvable:$true] %s1208_s26 }
   0x7   :  { %v41_v2 = vld [vmem:[%s1803_s1 + $0x30] sm:$0xff]  ;;  %61 = vmatpush.msra.mxu0 %v39_v0  ;;  %81 = vmatpush.msra.mxu1 %v40_v1  ;;  %v42_v3 = vld [vmem:[%s1803_s1 + $0x38] sm:$0xff]  ;;  %v35_v4 = vld [vmem:[%s1803_s1] sm:$0xff] }
   0x8   :  { %v36_v5 = vld [vmem:[%s1803_s1 + $0x8] sm:$0xff]  ;;  %101 = vmatpush.msra.mxu2 %v41_v2  ;;  %121 = vmatpush.msra.mxu3 %v42_v3  ;;  %v37_v6 = vld [vmem:[%s1803_s1 + $0x10] sm:$0xff]  ;;  %v38_v7 = vld [vmem:[%s1803_s1 + $0x18] sm:$0xff] }
   0x9   :  { %v34_v8 = vld [vmem:[%s1802_s0] sm:$0x3]  ;;  %62 = vmatpush.msra.mxu0 %v35_v4  ;;  %82 = vmatpush.msra.mxu1 %v36_v5 }
   0xa   :  { %102 = vmatpush.msra.mxu2 %v37_v6  ;;  %122 = vmatpush.msra.mxu3 %v38_v7  ;;  %v363_v9 = vld [vmem:[#allocation2 + $0x1e0] sm:$0xff] }
   0xb   :  { %v427_v10 = vld [vmem:[#allocation2 + $0x3e0] sm:$0xff]  ;;  %1218 = vmatmul.msk.f32.vlgmr.msra.gmra.mxu0 %vm43_vm0, %v34_v8  ;;  %1219 = vmatmul.msk.f32.vlgmr.msra.gmra.mxu1 %vm43_vm0, %v34_v8 }
   0xc   :  { %v491_v11 = vld [vmem:[#allocation2 + $0x5e0] sm:$0xff]  ;;  %1220 = vmatmul.msk.f32.vlgmr.msra.gmra.mxu2 %vm43_vm0, %v34_v8  ;;  %1221 = vmatmul.msk.f32.vlgmr.msra.gmra.mxu3 %vm43_vm0, %v34_v8 }
   0xd   :  { %v359_v12 = vld [vmem:[#allocation2 + $0x1c0] sm:$0xff]  ;;  %559 = vmatpush.msrb.mxu0 %v363_v9  ;;  %579 = vmatpush.msrb.mxu1 %v427_v10  ;;  %v364_v9 = vld [vmem:[#allocation2 + $0x1e8] sm:$0xff] }
   0xe   :  { %v423_v13 = vld [vmem:[#allocation2 + $0x3c0] sm:$0xff]  ;;  %599 = vmatpush.msrb.mxu2 %v491_v11  ;;  %v428_v10 = vld [vmem:[#allocation2 + $0x3e8] sm:$0xff] }
   0xf   :  { %v555_v14 = vld [vmem:[#allocation2 + $0x7e0] sm:$0xff]  ;;  %560 = vmatpush.msrb.mxu0 %v359_v12  ;;  %580 = vmatpush.msrb.mxu1 %v423_v13  ;;  %v360_v13 = vld [vmem:[#allocation2 + $0x1c8] sm:$0xff] }
  0x10   :  { %v487_v15 = vld [vmem:[#allocation2 + $0x5c0] sm:$0xff]  ;;  %619 = vmatpush.msrb.mxu3 %v555_v14 }
  0x11   :  { %v551_v16 = vld [vmem:[#allocation2 + $0x7c0] sm:$0xff]  ;;  %600 = vmatpush.msrb.mxu2 %v487_v15 }
  0x12   :  { %v355_v17 = vld [vmem:[#allocation2 + $0x1a0] sm:$0xff]  ;;  %620 = vmatpush.msrb.mxu3 %v551_v16  ;;  %v424_v16 = vld [vmem:[#allocation2 + $0x3c8] sm:$0xff] }
  0x13   :  { %v419_v18 = vld [vmem:[#allocation2 + $0x3a0] sm:$0xff]  ;;  %561 = vmatpush.msrb.mxu0 %v355_v17 }
  0x14   :  { %v351_v19 = vld [vmem:[#allocation2 + $0x180] sm:$0xff]  ;;  %581 = vmatpush.msrb.mxu1 %v419_v18 }
  0x15   :  { %v415_v20 = vld [vmem:[#allocation2 + $0x380] sm:$0xff]  ;;  %562 = vmatpush.msrb.mxu0 %v351_v19  ;;  %v356_v19 = vld [vmem:[#allocation2 + $0x1a8] sm:$0xff] }
  0x16   :  { %v347_v21 = vld [vmem:[#allocation2 + $0x160] sm:$0xff]  ;;  %582 = vmatpush.msrb.mxu1 %v415_v20  ;;  %v420_v20 = vld [vmem:[#allocation2 + $0x3a8] sm:$0xff] }
  0x17   :  { %v411_v22 = vld [vmem:[#allocation2 + $0x360] sm:$0xff]  ;;  %563 = vmatpush.msrb.mxu0 %v347_v21 }
  0x18   :  { %583 = vmatpush.msrb.mxu1 %v411_v22  ;;  %v343_v23 = vld [vmem:[#allocation2 + $0x140] sm:$0xff] }
  0x19   :  { %v407_v24 = vld [vmem:[#allocation2 + $0x340] sm:$0xff]  ;;  %564 = vmatpush.msrb.mxu0 %v343_v23 }
  0x1a   :  { %v483_v25 = vld [vmem:[#allocation2 + $0x5a0] sm:$0xff]  ;;  %584 = vmatpush.msrb.mxu1 %v407_v24 }
  0x1b   :  { %v547_v26 = vld [vmem:[#allocation2 + $0x7a0] sm:$0xff]  ;;  %601 = vmatpush.msrb.mxu2 %v483_v25 }
  0x1c   :  { %621 = vmatpush.msrb.mxu3 %v547_v26  ;;  %v339_v27 = vld [vmem:[#allocation2 + $0x120] sm:$0xff] }
  0x1d   :  { %v403_v28 = vld [vmem:[#allocation2 + $0x320] sm:$0xff]  ;;  %565 = vmatpush.msrb.mxu0 %v339_v27 }
  0x1e   :  { %v479_v29 = vld [vmem:[#allocation2 + $0x580] sm:$0xff]  ;;  %585 = vmatpush.msrb.mxu1 %v403_v28 }
  0x1f   :  { %v543_v30 = vld [vmem:[#allocation2 + $0x780] sm:$0xff]  ;;  %602 = vmatpush.msrb.mxu2 %v479_v29 }
  0x20   :  { %622 = vmatpush.msrb.mxu3 %v543_v30  ;;  %v335_v31 = vld [vmem:[#allocation2 + $0x100] sm:$0xff] }
  0x21   :  { %v399_v32 = vld [vmem:[#allocation2 + $0x300] sm:$0xff]  ;;  %566 = vmatpush.msrb.mxu0 %v335_v31 }
  0x22   :  { %v475_v33 = vld [vmem:[#allocation2 + $0x560] sm:$0xff]  ;;  %586 = vmatpush.msrb.mxu1 %v399_v32 }
  0x23   :  { %v539_v34 = vld [vmem:[#allocation2 + $0x760] sm:$0xff]  ;;  %603 = vmatpush.msrb.mxu2 %v475_v33 }
  0x24   :  { %623 = vmatpush.msrb.mxu3 %v539_v34  ;;  %v331_v35 = vld [vmem:[#allocation2 + $0xe0] sm:$0xff] }
  0x25   :  { %v395_v36 = vld [vmem:[#allocation2 + $0x2e0] sm:$0xff]  ;;  %567 = vmatpush.msrb.mxu0 %v331_v35 }
  0x26   :  { %v471_v37 = vld [vmem:[#allocation2 + $0x540] sm:$0xff]  ;;  %587 = vmatpush.msrb.mxu1 %v395_v36 }
  0x27   :  { %v535_v38 = vld [vmem:[#allocation2 + $0x740] sm:$0xff]  ;;  %604 = vmatpush.msrb.mxu2 %v471_v37 }
  0x28   :  { %624 = vmatpush.msrb.mxu3 %v535_v38  ;;  %v327_v39 = vld [vmem:[#allocation2 + $0xc0] sm:$0xff] }
  0x29   :  { %v391_v40 = vld [vmem:[#allocation2 + $0x2c0] sm:$0xff]  ;;  %568 = vmatpush.msrb.mxu0 %v327_v39  ;;  %v352_v39 = vld [vmem:[#allocation2 + $0x188] sm:$0xff] }
  0x2a   :  { %v467_v41 = vld [vmem:[#allocation2 + $0x520] sm:$0xff]  ;;  %588 = vmatpush.msrb.mxu1 %v391_v40  ;;  %v416_v40 = vld [vmem:[#allocation2 + $0x388] sm:$0xff] }
  0x2b   :  { %v531_v42 = vld [vmem:[#allocation2 + $0x720] sm:$0xff]  ;;  %605 = vmatpush.msrb.mxu2 %v467_v41  ;;  %v492_v41 = vld [vmem:[#allocation2 + $0x5e8] sm:$0xff] }
  0x2c   :  { %625 = vmatpush.msrb.mxu3 %v531_v42  ;;  %v323_v43 = vld [vmem:[#allocation2 + $0xa0] sm:$0xff] }
  0x2d   :  { %v387_v44 = vld [vmem:[#allocation2 + $0x2a0] sm:$0xff]  ;;  %569 = vmatpush.msrb.mxu0 %v323_v43 }
  0x2e   :  { %v463_v45 = vld [vmem:[#allocation2 + $0x500] sm:$0xff]  ;;  %589 = vmatpush.msrb.mxu1 %v387_v44 }
  0x2f   :  { %v527_v46 = vld [vmem:[#allocation2 + $0x700] sm:$0xff]  ;;  %606 = vmatpush.msrb.mxu2 %v463_v45  ;;  %v556_v45 = vld [vmem:[#allocation2 + $0x7e8] sm:$0xff] }
  0x30   :  { %626 = vmatpush.msrb.mxu3 %v527_v46  ;;  %v319_v47 = vld [vmem:[#allocation2 + $0x80] sm:$0xff]  ;;  %v348_v46 = vld [vmem:[#allocation2 + $0x168] sm:$0xff] }
  0x31   :  { %v383_v48 = vld [vmem:[#allocation2 + $0x280] sm:$0xff]  ;;  %570 = vmatpush.msrb.mxu0 %v319_v47  ;;  %v412_v47 = vld [vmem:[#allocation2 + $0x368] sm:$0xff] }
  0x32   :  { %v459_v49 = vld [vmem:[#allocation2 + $0x4e0] sm:$0xff]  ;;  %590 = vmatpush.msrb.mxu1 %v383_v48 }
  0x33   :  { %v523_v50 = vld [vmem:[#allocation2 + $0x6e0] sm:$0xff]  ;;  %607 = vmatpush.msrb.mxu2 %v459_v49 }
  0x34   :  { %627 = vmatpush.msrb.mxu3 %v523_v50  ;;  %v315_v51 = vld [vmem:[#allocation2 + $0x60] sm:$0xff] }
  0x35   :  { %v379_v52 = vld [vmem:[#allocation2 + $0x260] sm:$0xff]  ;;  %571 = vmatpush.msrb.mxu0 %v315_v51 }
  0x36   :  { %v455_v53 = vld [vmem:[#allocation2 + $0x4c0] sm:$0xff]  ;;  %591 = vmatpush.msrb.mxu1 %v379_v52 }
  0x37   :  { %v519_v54 = vld [vmem:[#allocation2 + $0x6c0] sm:$0xff]  ;;  %608 = vmatpush.msrb.mxu2 %v455_v53 }
  0x38   :  { %628 = vmatpush.msrb.mxu3 %v519_v54  ;;  %v311_v55 = vld [vmem:[#allocation2 + $0x40] sm:$0xff] }
  0x39   :  { %v375_v56 = vld [vmem:[#allocation2 + $0x240] sm:$0xff]  ;;  %572 = vmatpush.msrb.mxu0 %v311_v55 }
  0x3a   :  { %v451_v57 = vld [vmem:[#allocation2 + $0x4a0] sm:$0xff]  ;;  %592 = vmatpush.msrb.mxu1 %v375_v56 }
  0x3b   :  { %v515_v58 = vld [vmem:[#allocation2 + $0x6a0] sm:$0xff]  ;;  %609 = vmatpush.msrb.mxu2 %v451_v57 }
  0x3c   :  { %629 = vmatpush.msrb.mxu3 %v515_v58  ;;  %v307_v59 = vld [vmem:[#allocation2 + $0x20] sm:$0xff]  ;;  %v488_v58 = vld [vmem:[#allocation2 + $0x5c8] sm:$0xff] }
  0x3d   :  { %v371_v60 = vld [vmem:[#allocation2 + $0x220] sm:$0xff]  ;;  %573 = vmatpush.msrb.mxu0 %v307_v59  ;;  %v552_v59 = vld [vmem:[#allocation2 + $0x7c8] sm:$0xff] }
  0x3e   :  { %v447_v61 = vld [vmem:[#allocation2 + $0x480] sm:$0xff]  ;;  %593 = vmatpush.msrb.mxu1 %v371_v60  ;;  %v344_v60 = vld [vmem:[#allocation2 + $0x148] sm:$0xff] }
  0x3f   :  { %v511_v0 = vld [vmem:[#allocation2 + $0x680] sm:$0xff]  ;;  %610 = vmatpush.msrb.mxu2 %v447_v61 }
  0x40   :  { %630 = vmatpush.msrb.mxu3 %v511_v0  ;;  %v303_v3 = vld [vmem:[#allocation2] sm:$0xff] }
  0x41   :  { %v367_v4 = vld [vmem:[#allocation2 + $0x200] sm:$0xff]  ;;  %574 = vmatpush.msrb.mxu0 %v303_v3 }
  0x42   :  { %v443_v5 = vld [vmem:[#allocation2 + $0x460] sm:$0xff]  ;;  %594 = vmatpush.msrb.mxu1 %v367_v4  ;;  %v408_v4 = vld [vmem:[#allocation2 + $0x348] sm:$0xff] }
  0x43   :  { %v507_v8 = vld [vmem:[#allocation2 + $0x660] sm:$0xff]  ;;  %611 = vmatpush.msrb.mxu2 %v443_v5  ;;  %639 = vmatpush.msra.mxu0 %v364_v9  ;;  %v484_v5 = vld [vmem:[#allocation2 + $0x5a8] sm:$0xff] }
  0x44   :  { %631 = vmatpush.msrb.mxu3 %v507_v8  ;;  %v439_v11 = vld [vmem:[#allocation2 + $0x440] sm:$0xff]  ;;  %659 = vmatpush.msra.mxu1 %v428_v10 }
  0x45   :  { %v503_v12 = vld [vmem:[#allocation2 + $0x640] sm:$0xff]  ;;  %612 = vmatpush.msrb.mxu2 %v439_v11  ;;  %640 = vmatpush.msra.mxu0 %v360_v13  ;;  %v340_v13 = vld [vmem:[#allocation2 + $0x128] sm:$0xff] }
  0x46   :  { %v435_v17 = vld [vmem:[#allocation2 + $0x420] sm:$0xff]  ;;  %632 = vmatpush.msrb.mxu3 %v503_v12  ;;  %660 = vmatpush.msra.mxu1 %v424_v16  ;;  %v548_v12 = vld [vmem:[#allocation2 + $0x7a8] sm:$0xff] }
  0x47   :  { %v499_v18 = vld [vmem:[#allocation2 + $0x620] sm:$0xff]  ;;  %613 = vmatpush.msrb.mxu2 %v435_v17  ;;  %641 = vmatpush.msra.mxu0 %v356_v19  ;;  %v480_v19 = vld [vmem:[#allocation2 + $0x588] sm:$0xff] }
  0x48   :  { %633 = vmatpush.msrb.mxu3 %v499_v18  ;;  %661 = vmatpush.msra.mxu1 %v420_v20  ;;  %v431_v34 = vld [vmem:[#allocation2 + $0x400] sm:$0xff]  ;;  %v404_v18 = vld [vmem:[#allocation2 + $0x328] sm:$0xff] }
  0x49   :  { %v495_v35 = vld [vmem:[#allocation2 + $0x600] sm:$0xff]  ;;  %614 = vmatpush.msrb.mxu2 %v431_v34  ;;  %642 = vmatpush.msra.mxu0 %v352_v39  ;;  %v544_v20 = vld [vmem:[#allocation2 + $0x788] sm:$0xff] }
  0x4a   :  { %634 = vmatpush.msrb.mxu3 %v495_v35  ;;  %662 = vmatpush.msra.mxu1 %v416_v40  ;;  %v400_v34 = vld [vmem:[#allocation2 + $0x308] sm:$0xff] }
  0x4b   :  { %679 = vmatpush.msra.mxu2 %v492_v41  ;;  %643 = vmatpush.msra.mxu0 %v348_v46  ;;  %v476_v35 = vld [vmem:[#allocation2 + $0x568] sm:$0xff] }
  0x4c   :  { %699 = vmatpush.msra.mxu3 %v556_v45  ;;  %663 = vmatpush.msra.mxu1 %v412_v47  ;;  %v540_v39 = vld [vmem:[#allocation2 + $0x768] sm:$0xff] }
  0x4d   :  { %680 = vmatpush.msra.mxu2 %v488_v58  ;;  %644 = vmatpush.msra.mxu0 %v344_v60  ;;  %v332_v40 = vld [vmem:[#allocation2 + $0xe8] sm:$0xff] }
  0x4e   :  { %700 = vmatpush.msra.mxu3 %v552_v59  ;;  %664 = vmatpush.msra.mxu1 %v408_v4  ;;  %v396_v41 = vld [vmem:[#allocation2 + $0x2e8] sm:$0xff] }
  0x4f   :  { %681 = vmatpush.msra.mxu2 %v484_v5  ;;  %645 = vmatpush.msra.mxu0 %v340_v13  ;;  %v468_v58 = vld [vmem:[#allocation2 + $0x528] sm:$0xff] }
  0x50   :  { %701 = vmatpush.msra.mxu3 %v548_v12  ;;  %665 = vmatpush.msra.mxu1 %v404_v18  ;;  %v532_v59 = vld [vmem:[#allocation2 + $0x728] sm:$0xff] }
  0x51   :  { %682 = vmatpush.msra.mxu2 %v480_v19  ;;  %v324_v60 = vld [vmem:[#allocation2 + $0xa8] sm:$0xff] }
  0x52   :  { %702 = vmatpush.msra.mxu3 %v544_v20  ;;  %666 = vmatpush.msra.mxu1 %v400_v34  ;;  %v528_v4 = vld [vmem:[#allocation2 + $0x708] sm:$0xff] }
  0x53   :  { %683 = vmatpush.msra.mxu2 %v476_v35  ;;  %v460_v12 = vld [vmem:[#allocation2 + $0x4e8] sm:$0xff] }
  0x54   :  { %703 = vmatpush.msra.mxu3 %v540_v39  ;;  %667 = vmatpush.msra.mxu1 %v396_v41  ;;  %v380_v18 = vld [vmem:[#allocation2 + $0x268] sm:$0xff] }
  0x55   :  { %v516_v34 = vld [vmem:[#allocation2 + $0x6a8] sm:$0xff] }
  0x56   :  { %v372_v39 = vld [vmem:[#allocation2 + $0x228] sm:$0xff] }
  0x88   :  { %v1361_v62 = vpop.f32.mrf.mxu0  ;;  %v1363_v63 = vpop.f32.mrf.mxu1 }
  0x89   :  { %v1366_v1 = vmul.f32 0.70710677, %v1361_v62  ;;  %v1369_v2 = vmul.f32 0.70710677, %v1363_v63 }
  0x8b   :  { %v135_v6 = vmul.f32 %v1366_v1, %v1366_v1  ;;  %v175_v7 = vmul.f32 %v1369_v2, %v1369_v2 }
  0x8d   :  { %v1375_v14 = vmin.f32 %v135_v6, 16.0  ;;  %v1377_v15 = vmin.f32 %v175_v7, 16.0 }
  0x8f   :  { %v137_v21 = vmul.f32 2.1237322e-06, %v1375_v14  ;;  %v148_v22 = vmul.f32 3.8918573e-05, %v1375_v14  ;;  %v177_v23 = vmul.f32 2.1237322e-06, %v1377_v15  ;;  %v1382_v24 = vpop.f32.mrf.mxu2  ;;  %v1384_v25 = vpop.f32.mrf.mxu3 }
  0x90   :  { %v188_v26 = vmul.f32 3.8918573e-05, %v1377_v15  ;;  %v1388_v27 = vmul.f32 0.70710677, %v1382_v24  ;;  %v1393_v33 = vmul.f32 0.70710677, %v1384_v25 }
  0x91   :  { %v138_v28 = vadd.f32 0.00028619796, %v137_v21  ;;  %v149_v29 = vadd.f32 0.001143296, %v148_v22  ;;  %v178_v30 = vadd.f32 0.00028619796, %v177_v23 }
  0x92   :  { %v189_v31 = vadd.f32 0.001143296, %v188_v26  ;;  %v215_v32 = vmul.f32 %v1388_v27, %v1388_v27  ;;  %v255_v44 = vmul.f32 %v1393_v33, %v1393_v33 }
  0x93   :  { %v139_v36 = vmul.f32 %v138_v28, %v1375_v14  ;;  %v150_v37 = vmul.f32 %v149_v29, %v1375_v14  ;;  %v179_v38 = vmul.f32 %v178_v30, %v1377_v15 }
  0x94   :  { %v190_v42 = vmul.f32 %v189_v31, %v1377_v15  ;;  %v1399_v43 = vmin.f32 %v215_v32, 16.0  ;;  %v1408_v57 = vmin.f32 %v255_v44, 16.0  ;;  %v336_v32 = vld [vmem:[#allocation2 + $0x108] sm:$0xff] }
  0x95   :  { %v140_v48 = vadd.f32 0.0036580483, %v139_v36  ;;  %v151_v49 = vadd.f32 0.014752088, %v150_v37  ;;  %v180_v50 = vadd.f32 0.0036580483, %v179_v38  ;;  %646 = vmatpush.msra.mxu0 %v336_v32 }
  0x96   :  { %v191_v51 = vadd.f32 0.014752088, %v190_v42  ;;  %v217_v52 = vmul.f32 2.1237322e-06, %v1399_v43  ;;  %v228_v53 = vmul.f32 3.8918573e-05, %v1399_v43 }
  0x97   :  { %v141_v54 = vmul.f32 %v140_v48, %v1375_v14  ;;  %v152_v55 = vmul.f32 %v151_v49, %v1375_v14  ;;  %v181_v56 = vmul.f32 %v180_v50, %v1377_v15  ;;  %v268_v17 = vmul.f32 3.8918573e-05, %v1408_v57  ;;  %647 = vmatpush.msra.mxu0 %v332_v40  ;;  %v472_v48 = vld [vmem:[#allocation2 + $0x548] sm:$0xff] }
  0x98   :  { %v192_v61 = vmul.f32 %v191_v51, %v1377_v15  ;;  %v218_v0 = vadd.f32 0.00028619796, %v217_v52  ;;  %v229_v3 = vadd.f32 0.001143296, %v228_v53  ;;  %v257_v23 = vmul.f32 2.1237322e-06, %v1408_v57  ;;  %684 = vmatpush.msra.mxu2 %v472_v48 }
  0x99   :  { %v142_v6 = vadd.f32 0.05243302, %v141_v54  ;;  %v153_v7 = vadd.f32 0.112945676, %v152_v55  ;;  %v182_v8 = vadd.f32 0.05243302, %v181_v56 }
  0x9a   :  { %v193_v9 = vadd.f32 0.112945676, %v192_v61  ;;  %v219_v10 = vmul.f32 %v218_v0, %v1399_v43  ;;  %v230_v11 = vmul.f32 %v229_v3, %v1399_v43  ;;  %v269_v38 = vadd.f32 0.001143296, %v268_v17  ;;  %v536_v52 = vld [vmem:[#allocation2 + $0x748] sm:$0xff]  ;;  %685 = vmatpush.msra.mxu2 %v468_v58 }
  0x9b   :  { %v154_v16 = vmul.f32 %v153_v7, %v1375_v14  ;;  %v143_v26 = vmul.f32 %v142_v6, %v1375_v14  ;;  %v183_v37 = vmul.f32 %v182_v8, %v1377_v15  ;;  %v258_v45 = vadd.f32 0.00028619796, %v257_v23  ;;  %v328_v53 = vld [vmem:[#allocation2 + $0xc8] sm:$0xff]  ;;  %704 = vmatpush.msra.mxu3 %v536_v52 }
  0x9c   :  { %v194_v21 = vmul.f32 %v193_v9, %v1377_v15  ;;  %v231_v22 = vadd.f32 0.014752088, %v230_v11  ;;  %v220_v29 = vadd.f32 0.0036580483, %v219_v10  ;;  %v392_v54 = vld [vmem:[#allocation2 + $0x2c8] sm:$0xff]  ;;  %v270_v56 = vmul.f32 %v269_v38, %v1408_v57  ;;  %648 = vmatpush.msra.mxu0 %v328_v53 }
  0x9d   :  { %v155_v28 = vadd.f32 0.4994258, %v154_v16  ;;  %v144_v46 = vadd.f32 0.18741608, %v143_v26  ;;  %v184_v55 = vadd.f32 0.18741608, %v183_v37  ;;  %v259_v61 = vmul.f32 %v258_v45, %v1408_v57  ;;  %668 = vmatpush.msra.mxu1 %v392_v54  ;;  %705 = vmatpush.msra.mxu3 %v532_v59 }
  0x9e   :  { %v195_v30 = vadd.f32 0.4994258, %v194_v21  ;;  %v232_v31 = vmul.f32 %v231_v22, %v1399_v43  ;;  %v221_v50 = vmul.f32 %v220_v29, %v1399_v43  ;;  %v388_v0 = vld [vmem:[#allocation2 + $0x2a8] sm:$0xff]  ;;  %649 = vmatpush.msra.mxu0 %v324_v60  ;;  %v271_v10 = vadd.f32 0.014752088, %v270_v56 }
  0x9f   :  { %v156_v36 = vmul.f32 %v155_v28, %v1375_v14  ;;  %v464_v3 = vld [vmem:[#allocation2 + $0x508] sm:$0xff]  ;;  %v145_v5 = vmul.f32 %v144_v46, %v1375_v14  ;;  %669 = vmatpush.msra.mxu1 %v388_v0  ;;  %v185_v9 = vmul.f32 %v184_v55, %v1377_v15  ;;  %706 = vmatpush.msra.mxu3 %v528_v4  ;;  %v260_v16 = vadd.f32 0.0036580483, %v259_v61 }
  0xa0   :  { %v196_v42 = vmul.f32 %v195_v30, %v1377_v15  ;;  %v233_v44 = vadd.f32 0.112945676, %v232_v31  ;;  %v222_v6 = vadd.f32 0.05243302, %v221_v50  ;;  %686 = vmatpush.msra.mxu2 %v464_v3  ;;  %v320_v8 = vld [vmem:[#allocation2 + $0x88] sm:$0xff]  ;;  %v272_v21 = vmul.f32 %v271_v10, %v1408_v57 }
  0xa1   :  { %v1422_v47 = vadd.f32 1.0, %v156_v36  ;;  %650 = vmatpush.msra.mxu0 %v320_v8  ;;  %v384_v11 = vld [vmem:[#allocation2 + $0x288] sm:$0xff]  ;;  %v146_v20 = vadd.f32 1.1283791, %v145_v5  ;;  %v186_v35 = vadd.f32 1.1283791, %v185_v9 }
  0xa2   :  { %v1424_v49 = vadd.f32 1.0, %v196_v42  ;;  %v234_v51 = vmul.f32 %v233_v44, %v1399_v43  ;;  %670 = vmatpush.msra.mxu1 %v384_v11  ;;  %687 = vmatpush.msra.mxu2 %v460_v12  ;;  %v524_v14 = vld [vmem:[#allocation2 + $0x6e8] sm:$0xff]  ;;  %v223_v29 = vmul.f32 %v222_v6, %v1399_v43  ;;  %v273_v37 = vadd.f32 0.112945676, %v272_v21 }
  0xa3   :  { %1234 = vrcp.f32 %v1422_v47  ;;  %v316_v17 = vld [vmem:[#allocation2 + $0x68] sm:$0xff]  ;;  %707 = vmatpush.msra.mxu3 %v524_v14  ;;  %v167_v41 = vand.u32 2147483647, %v1422_v47  ;;  %v261_v42 = vmul.f32 %v260_v16, %v1408_v57  ;;  %v147_v46 = vmul.f32 %v146_v20, %v1366_v1 }
  0xa4   :  { %1236 = vrcp.f32 %v1424_v49  ;;  %v235_v7 = vadd.f32 0.4994258, %v234_v51  ;;  %651 = vmatpush.msra.mxu0 %v316_v17  ;;  %v456_v15 = vld [vmem:[#allocation2 + $0x4c8] sm:$0xff]  ;;  %671 = vmatpush.msra.mxu1 %v380_v18  ;;  %v169_v48 = vand.u32 2147483648, %v1422_v47  ;;  %v274_v51 = vmul.f32 %v273_v37, %v1408_v57 }
  0xa5   :  { %v520_v22 = vld [vmem:[#allocation2 + $0x6c8] sm:$0xff]  ;;  %688 = vmatpush.msra.mxu2 %v456_v15  ;;  %v209_v56 = vand.u32 2147483648, %v1424_v49  ;;  %v224_v58 = vadd.f32 0.18741608, %v223_v29  ;;  %v207_v60 = vand.u32 2147483647, %v1424_v49  ;;  %vm163_vm3 = vweird.f32 %v1422_v47 }
  0xa6   :  { %v236_v13 = vmul.f32 %v235_v7, %v1399_v43  ;;  %v312_v23 = vld [vmem:[#allocation2 + $0x48] sm:$0xff]  ;;  %708 = vmatpush.msra.mxu3 %v520_v22  ;;  %v275_v61 = vadd.f32 0.4994258, %v274_v51  ;;  %v187_v4 = vmul.f32 %v186_v35, %v1369_v2  ;;  %v262_v5 = vadd.f32 0.05243302, %v261_v42  ;;  %v349_v7 = vld [vmem:[#allocation2 + $0x170] sm:$0xff] }
  0xa7   :  { %v376_v31 = vld [vmem:[#allocation2 + $0x248] sm:$0xff]  ;;  %652 = vmatpush.msra.mxu0 %v312_v23  ;;  %v170_v8 = vor.u32 1.1754944e-38, %v169_v48  ;;  %vm203_vm5 = vweird.f32 %v1424_v49  ;;  %vm168_vm6 = vcmp.eq.f32.partialorder %v167_v41, 8.507059e+37  ;;  %v210_v12 = vor.u32 1.1754944e-38, %v209_v56 }
  0xa8   :  { %v1443_v30 = vadd.f32 1.0, %v236_v13  ;;  %v452_v32 = vld [vmem:[#allocation2 + $0x4a8] sm:$0xff]  ;;  %672 = vmatpush.msra.mxu1 %v376_v31  ;;  %709 = vmatpush.msra.mxu3 %v516_v34  ;;  %v276_v10 = vmul.f32 %v275_v61, %v1408_v57  ;;  %v225_v13 = vmul.f32 %v224_v58, %v1399_v43  ;;  %vm208_vm8 = vcmp.eq.f32.partialorder %v207_v60, 8.507059e+37  ;;  %v421_v58 = vld [vmem:[#allocation2 + $0x3b0] sm:$0xff] }
  0xa9   :  { %v1435_v19 = vpop.eup %1234  ;;  %v308_v38 = vld [vmem:[#allocation2 + $0x28] sm:$0xff]  ;;  %689 = vmatpush.msra.mxu2 %v452_v32  ;;  %v127_v35 = vmul.f32 0.5, %v1361_v62  ;;  %v429_v62 = vld [vmem:[#allocation2 + $0x3f0] sm:$0xff] }
  0xaa   :  { %v1438_v26 = vpop.eup %1236  ;;  %v159_v28 = vmul.f32 %v1435_v19, %v1422_v47  ;;  %1238 = vrcp.f32 %v1443_v30  ;;  %v448_v44 = vld [vmem:[#allocation2 + $0x488] sm:$0xff]  ;;  %653 = vmatpush.msra.mxu0 %v308_v38  ;;  %vm164_vm1 = vweird.f32 %v1435_v19  ;;  %673 = vmatpush.msra.mxu1 %v372_v39  ;;  %v1480_v15 = vadd.f32 1.0, %v276_v10  ;;  %v353_v60 = vld [vmem:[#allocation2 + $0x190] sm:$0xff] }
  0xab   :  { %v199_v36 = vmul.f32 %v1438_v26, %v1424_v49  ;;  %v512_v45 = vld [vmem:[#allocation2 + $0x688] sm:$0xff]  ;;  %690 = vmatpush.msra.mxu2 %v448_v44  ;;  %vm204_vm2 = vweird.f32 %v1438_v26  ;;  %vm1464_vm4 = vmor %vm163_vm3, %vm164_vm1  ;;  %v226_v29 = vadd.f32 1.1283791, %v225_v13  ;;  %v247_v34 = vand.u32 2147483647, %v1443_v30  ;;  %v365_v44 = vld [vmem:[#allocation2 + $0x1f0] sm:$0xff] }
  0xac   :  { %v160_v40 = vsub.f32 1.0, %v159_v28  ;;  %v304_v52 = vld [vmem:[#allocation2 + $0x8] sm:$0xff]  ;;  %710 = vmatpush.msra.mxu3 %v512_v45  ;;  %vm205_vm7 = vmor %vm203_vm5, %vm204_vm2  ;;  %1240 = vrcp.f32 %v1480_v15  ;;  %v128_v38 = vmul.f32 0.5, %v1363_v63  ;;  %vm243_vm10 = vweird.f32 %v1443_v30  ;;  %v409_v13 = vld [vmem:[#allocation2 + $0x350] sm:$0xff] }
  0xad   :  { %v200_v50 = vsub.f32 1.0, %v199_v36  ;;  %v368_v53 = vld [vmem:[#allocation2 + $0x208] sm:$0xff]  ;;  %654 = vmatpush.msra.mxu0 %v304_v52  ;;  %vm248_vm12 = vcmp.eq.f32.partialorder %v247_v34, 8.507059e+37  ;;  %v361_v52 = vld [vmem:[#allocation2 + $0x1d0] sm:$0xff]  ;;  %vm283_vm14 = vweird.f32 %v1480_v15 }
  0xae   :  { %v444_v54 = vld [vmem:[#allocation2 + $0x468] sm:$0xff]  ;;  %v161_v55 = vmul.f32 %v1435_v19, %v160_v40  ;;  %674 = vmatpush.msra.mxu1 %v368_v53  ;;  %v469_v34 = vld [vmem:[#allocation2 + $0x530] sm:$0xff] }
  0xaf   :  { %v508_v1 = vld [vmem:[#allocation2 + $0x668] sm:$0xff]  ;;  %v201_v59 = vmul.f32 %v1438_v26, %v200_v50  ;;  %691 = vmatpush.msra.mxu2 %v444_v54  ;;  %v425_v54 = vld [vmem:[#allocation2 + $0x3d0] sm:$0xff] }
  0xb0   :  { %v440_v0 = vld [vmem:[#allocation2 + $0x448] sm:$0xff]  ;;  %v162_v3 = vadd.f32 %v1435_v19, %v161_v55  ;;  %711 = vmatpush.msra.mxu3 %v508_v1  ;;  %v1239_v2 = vpop.eup %1238  ;;  %v357_v55 = vld [vmem:[#allocation2 + $0x1b0] sm:$0xff]  ;;  %v129_v1 = vmul.f32 0.5, %v1382_v24 }
  0xb1   :  { %v504_v6 = vld [vmem:[#allocation2 + $0x648] sm:$0xff]  ;;  %v202_v9 = vadd.f32 %v1438_v26, %v201_v59  ;;  %692 = vmatpush.msra.mxu2 %v440_v0  ;;  %v239_v17 = vmul.f32 %v1239_v2, %v1443_v30  ;;  %vm244_vm9 = vweird.f32 %v1239_v2  ;;  %v493_v24 = vld [vmem:[#allocation2 + $0x5f0] sm:$0xff] }
  0xb2   :  { %v436_v47 = vld [vmem:[#allocation2 + $0x428] sm:$0xff]  ;;  %v166_v11 = vsel %vm1464_vm4, %v1435_v19, %v162_v3  ;;  %712 = vmatpush.msra.mxu3 %v504_v6  ;;  %v263_v19 = vmul.f32 %v262_v5, %v1408_v57  ;;  %vm245_vm11 = vmor %vm243_vm10, %vm244_vm9  ;;  %v1241_v50 = vpop.eup %1240  ;;  %v287_v3 = vand.u32 2147483647, %v1480_v15 }
  0xb3   :  { %v500_v16 = vld [vmem:[#allocation2 + $0x628] sm:$0xff]  ;;  %v171_v14 = vsel %vm168_vm6, %v170_v8, %v166_v11  ;;  %v206_v49 = vsel %vm205_vm7, %v1438_v26, %v202_v9  ;;  %693 = vmatpush.msra.mxu2 %v436_v47  ;;  %v240_v43 = vsub.f32 1.0, %v239_v17  ;;  %v249_v26 = vand.u32 2147483648, %v1443_v30  ;;  %v413_v9 = vld [vmem:[#allocation2 + $0x370] sm:$0xff] }
  0xb4   :  { %v432_v18 = vld [vmem:[#allocation2 + $0x408] sm:$0xff]  ;;  %v172_v20 = vmul.f32 %v171_v14, %v147_v46  ;;  %v211_v21 = vsel %vm208_vm8, %v210_v12, %v206_v49  ;;  %713 = vmatpush.msra.mxu3 %v500_v16  ;;  %v264_v37 = vadd.f32 0.18741608, %v263_v19  ;;  %v227_v46 = vmul.f32 %v226_v29, %v1388_v27  ;;  %v345_v11 = vld [vmem:[#allocation2 + $0x150] sm:$0xff] }
  0xb5   :  { %v496_v22 = vld [vmem:[#allocation2 + $0x608] sm:$0xff]  ;;  %v212_v23 = vmul.f32 %v211_v21, %v187_v4  ;;  %694 = vmatpush.msra.mxu2 %v432_v18  ;;  %v241_v32 = vmul.f32 %v1239_v2, %v240_v43  ;;  %v250_v42 = vor.u32 1.1754944e-38, %v249_v26  ;;  %v279_v53 = vmul.f32 %v1241_v50, %v1480_v15  ;;  %v417_v4 = vld [vmem:[#allocation2 + $0x390] sm:$0xff] }
  0xb6   :  { %v1222_v28 = vclamps-f32 %v172_v20, 1.0  ;;  %714 = vmatpush.msra.mxu3 %v496_v22  ;;  %v265_v63 = vmul.f32 %v264_v37, %v1408_v57  ;;  %v289_v57 = vand.u32 2147483648, %v1480_v15  ;;  %vm284_vm13 = vweird.f32 %v1241_v50  ;;  %v485_v14 = vld [vmem:[#allocation2 + $0x5b0] sm:$0xff] }
  0xb7   :  { %v1223_v31 = vclamps-f32 %v212_v23, 1.0  ;;  %v242_v40 = vadd.f32 %v1239_v2, %v241_v32  ;;  %v280_v56 = vsub.f32 1.0, %v279_v53  ;;  %vm285_vm15 = vmor %vm283_vm14, %vm284_vm13  ;;  %vm288_vm0 = vcmp.eq.f32.partialorder %v287_v3, 8.507059e+37  ;;  %v341_v49 = vld [vmem:[#allocation2 + $0x130] sm:$0xff] }
  0xb8   :  { %v295_v36 = vadd.f32 1.0, %v1222_v28  ;;  %v266_v59 = vadd.f32 1.1283791, %v265_v63  ;;  %v290_v8 = vor.u32 1.1754944e-38, %v289_v57  ;;  %v405_v17 = vld [vmem:[#allocation2 + $0x330] sm:$0xff]  ;;  %v130_v19 = vmul.f32 0.5, %v1384_v25 }
  0xb9   :  { %v296_v39 = vadd.f32 1.0, %v1223_v31  ;;  %v246_v48 = vsel %vm245_vm11, %v1239_v2, %v242_v40  ;;  %v281_v0 = vmul.f32 %v1241_v50, %v280_v56  ;;  %v489_v2 = vld [vmem:[#allocation2 + $0x5d0] sm:$0xff] }
  0xba   :  { %v1488_v41 = vmul.f32 %v295_v36, %v127_v35  ;;  %v251_v51 = vsel %vm248_vm12, %v250_v42, %v246_v48  ;;  %v267_v10 = vmul.f32 %v266_v59, %v1393_v33  ;;  %v481_v18 = vld [vmem:[#allocation2 + $0x590] sm:$0xff] }
  0xbb   :  { %v1490_v45 = vmul.f32 %v296_v39, %v128_v38  ;;  %v252_v30 = vmul.f32 %v251_v51, %v227_v46  ;;  %v282_v6 = vadd.f32 %v1241_v50, %v281_v0  ;;  %v337_v20 = vld [vmem:[#allocation2 + $0x110] sm:$0xff] }
  0xbc   :  { %575 = vmatmul.f32.vlgmr.msrb.gmra.mxu0 %v1488_v41  ;;  %v401_v21 = vld [vmem:[#allocation2 + $0x310] sm:$0xff] }
  0xbd   :  { %595 = vmatmul.f32.vlgmr.msrb.gmra.mxu1 %v1490_v45  ;;  %719 = vmatpush.msrb.mxu0 %v365_v44  ;;  %v1224_v27 = vclamps-f32 %v252_v30, 1.0  ;;  %v286_v47 = vsel %vm285_vm15, %v1241_v50, %v282_v6  ;;  %v477_v22 = vld [vmem:[#allocation2 + $0x570] sm:$0xff]  ;;  %v426_v6 = vld [vmem:[#allocation2 + $0x3d8] sm:$0xff] }
  0xbe   :  { %739 = vmatpush.msrb.mxu1 %v429_v62  ;;  %v291_v12 = vsel %vm288_vm0, %v290_v8, %v286_v47  ;;  %v333_v23 = vld [vmem:[#allocation2 + $0xf0] sm:$0xff]  ;;  %v358_v8 = vld [vmem:[#allocation2 + $0x1b8] sm:$0xff] }
  0xbf   :  { %720 = vmatpush.msrb.mxu0 %v361_v52  ;;  %v297_v61 = vadd.f32 1.0, %v1224_v27  ;;  %v292_v16 = vmul.f32 %v291_v12, %v267_v10  ;;  %v397_v43 = vld [vmem:[#allocation2 + $0x2f0] sm:$0xff]  ;;  %v418_v12 = vld [vmem:[#allocation2 + $0x398] sm:$0xff] }
  0xc0   :  { %740 = vmatpush.msrb.mxu1 %v425_v54  ;;  %v557_v29 = vld [vmem:[#allocation2 + $0x7f0] sm:$0xff] }
  0xc1   :  { %721 = vmatpush.msrb.mxu0 %v357_v55  ;;  %v1500_v5 = vmul.f32 %v297_v61, %v129_v1  ;;  %v1225_v33 = vclamps-f32 %v292_v16, 1.0  ;;  %v473_v26 = vld [vmem:[#allocation2 + $0x550] sm:$0xff]  ;;  %v430_v61 = vld [vmem:[#allocation2 + $0x3f8] sm:$0xff] }
  0xc2   :  { %741 = vmatpush.msrb.mxu1 %v421_v58  ;;  %v329_v31 = vld [vmem:[#allocation2 + $0xd0] sm:$0xff]  ;;  %v350_v16 = vld [vmem:[#allocation2 + $0x178] sm:$0xff] }
  0xc3   :  { %722 = vmatpush.msrb.mxu0 %v353_v60  ;;  %615 = vmatmul.f32.vlgmr.msrb.gmra.mxu2 %v1500_v5  ;;  %v298_v15 = vadd.f32 1.0, %v1225_v33  ;;  %v393_v32 = vld [vmem:[#allocation2 + $0x2d0] sm:$0xff]  ;;  %v366_v60 = vld [vmem:[#allocation2 + $0x1f8] sm:$0xff] }
  0xc4   :  { %742 = vmatpush.msrb.mxu1 %v417_v4  ;;  %655 = vmatmul.f32.vlgmr.msra.gmra.mxu0 %v1488_v41  ;;  %v553_v25 = vld [vmem:[#allocation2 + $0x7d0] sm:$0xff]  ;;  %v362_v4 = vld [vmem:[#allocation2 + $0x1d8] sm:$0xff] }
  0xc5   :  { %675 = vmatmul.f32.vlgmr.msra.gmra.mxu1 %v1490_v45  ;;  %759 = vmatpush.msrb.mxu2 %v493_v24  ;;  %v1508_v28 = vmul.f32 %v298_v15, %v130_v19  ;;  %v325_v35 = vld [vmem:[#allocation2 + $0xb0] sm:$0xff]  ;;  %v346_v33 = vld [vmem:[#allocation2 + $0x158] sm:$0xff] }
  0xc6   :  { %723 = vmatpush.msrb.mxu0 %v349_v7  ;;  %743 = vmatpush.msrb.mxu1 %v413_v9  ;;  %v389_v36 = vld [vmem:[#allocation2 + $0x2b0] sm:$0xff]  ;;  %v422_v9 = vld [vmem:[#allocation2 + $0x3b8] sm:$0xff] }
  0xc7   :  { %760 = vmatpush.msrb.mxu2 %v489_v2  ;;  %635 = vmatmul.f32.vlgmr.msrb.gmra.mxu3 %v1508_v28  ;;  %v549_v37 = vld [vmem:[#allocation2 + $0x7b0] sm:$0xff]  ;;  %v354_v2 = vld [vmem:[#allocation2 + $0x198] sm:$0xff] }
  0xc8   :  { %724 = vmatpush.msrb.mxu0 %v345_v11  ;;  %744 = vmatpush.msrb.mxu1 %v409_v13  ;;  %v465_v38 = vld [vmem:[#allocation2 + $0x510] sm:$0xff]  ;;  %v494_v13 = vld [vmem:[#allocation2 + $0x5f8] sm:$0xff] }
  0xc9   :  { %761 = vmatpush.msrb.mxu2 %v485_v14  ;;  %779 = vmatpush.msrb.mxu3 %v557_v29  ;;  %v321_v39 = vld [vmem:[#allocation2 + $0x90] sm:$0xff]  ;;  %v342_v19 = vld [vmem:[#allocation2 + $0x138] sm:$0xff] }
  0xca   :  { %725 = vmatpush.msrb.mxu0 %v341_v49  ;;  %745 = vmatpush.msrb.mxu1 %v405_v17  ;;  %v385_v40 = vld [vmem:[#allocation2 + $0x290] sm:$0xff]  ;;  %v414_v49 = vld [vmem:[#allocation2 + $0x378] sm:$0xff] }
  0xcb   :  { %762 = vmatpush.msrb.mxu2 %v481_v18  ;;  %780 = vmatpush.msrb.mxu3 %v553_v25  ;;  %v545_v42 = vld [vmem:[#allocation2 + $0x790] sm:$0xff]  ;;  %v490_v17 = vld [vmem:[#allocation2 + $0x5d8] sm:$0xff] }
  0xcc   :  { %726 = vmatpush.msrb.mxu0 %v337_v20  ;;  %695 = vmatmul.f32.vlgmr.msra.gmra.mxu2 %v1500_v5  ;;  %v461_v44 = vld [vmem:[#allocation2 + $0x4f0] sm:$0xff]  ;;  %v410_v20 = vld [vmem:[#allocation2 + $0x358] sm:$0xff] }
  0xcd   :  { %746 = vmatpush.msrb.mxu1 %v401_v21  ;;  %763 = vmatpush.msrb.mxu2 %v477_v22  ;;  %v317_v46 = vld [vmem:[#allocation2 + $0x70] sm:$0xff]  ;;  %v486_v21 = vld [vmem:[#allocation2 + $0x5b8] sm:$0xff] }
  0xce   :  { %727 = vmatpush.msrb.mxu0 %v333_v23  ;;  %781 = vmatpush.msrb.mxu3 %v549_v37  ;;  %v541_v48 = vld [vmem:[#allocation2 + $0x770] sm:$0xff]  ;;  %v406_v22 = vld [vmem:[#allocation2 + $0x338] sm:$0xff] }
  0xcf   :  { %747 = vmatpush.msrb.mxu1 %v397_v43  ;;  %764 = vmatpush.msrb.mxu2 %v473_v26  ;;  %v381_v62 = vld [vmem:[#allocation2 + $0x270] sm:$0xff]  ;;  %v482_v23 = vld [vmem:[#allocation2 + $0x598] sm:$0xff] }
  0xd0   :  { %728 = vmatpush.msrb.mxu0 %v329_v31  ;;  %782 = vmatpush.msrb.mxu3 %v545_v42  ;;  %v457_v50 = vld [vmem:[#allocation2 + $0x4d0] sm:$0xff]  ;;  %v558_v43 = vld [vmem:[#allocation2 + $0x7f8] sm:$0xff] }
  0xd1   :  { %748 = vmatpush.msrb.mxu1 %v393_v32  ;;  %765 = vmatpush.msrb.mxu2 %v469_v34  ;;  %v313_v51 = vld [vmem:[#allocation2 + $0x50] sm:$0xff]  ;;  %v338_v29 = vld [vmem:[#allocation2 + $0x118] sm:$0xff] }
  0xd2   :  { %729 = vmatpush.msrb.mxu0 %v325_v35  ;;  %715 = vmatmul.f32.vlgmr.msra.gmra.mxu3 %v1508_v28  ;;  %v537_v63 = vld [vmem:[#allocation2 + $0x750] sm:$0xff]  ;;  %v402_v26 = vld [vmem:[#allocation2 + $0x318] sm:$0xff] }
  0xd3   :  { %749 = vmatpush.msrb.mxu1 %v389_v36  ;;  %766 = vmatpush.msrb.mxu2 %v465_v38  ;;  %v377_v52 = vld [vmem:[#allocation2 + $0x250] sm:$0xff]  ;;  %v478_v31 = vld [vmem:[#allocation2 + $0x578] sm:$0xff] }
  0xd4   :  { %730 = vmatpush.msrb.mxu0 %v321_v39  ;;  %783 = vmatpush.msrb.mxu3 %v541_v48  ;;  %v453_v30 = vld [vmem:[#allocation2 + $0x4b0] sm:$0xff]  ;;  %v554_v32 = vld [vmem:[#allocation2 + $0x7d8] sm:$0xff] }
  0xd5   :  { %750 = vmatpush.msrb.mxu1 %v385_v40  ;;  %767 = vmatpush.msrb.mxu2 %v461_v44  ;;  %v309_v53 = vld [vmem:[#allocation2 + $0x30] sm:$0xff]  ;;  %v334_v25 = vld [vmem:[#allocation2 + $0xf8] sm:$0xff] }
  0xd6   :  { %731 = vmatpush.msrb.mxu0 %v317_v46  ;;  %v533_v54 = vld [vmem:[#allocation2 + $0x730] sm:$0xff]  ;;  %784 = vmatpush.msrb.mxu3 %v537_v63  ;;  %v398_v34 = vld [vmem:[#allocation2 + $0x2f8] sm:$0xff] }
  0xd7   :  { %751 = vmatpush.msrb.mxu1 %v381_v62  ;;  %768 = vmatpush.msrb.mxu2 %v457_v50  ;;  %v373_v55 = vld [vmem:[#allocation2 + $0x230] sm:$0xff]  ;;  %v474_v35 = vld [vmem:[#allocation2 + $0x558] sm:$0xff] }
  0xd8   :  { %732 = vmatpush.msrb.mxu0 %v313_v51  ;;  %v449_v27 = vld [vmem:[#allocation2 + $0x490] sm:$0xff]  ;;  %785 = vmatpush.msrb.mxu3 %v533_v54  ;;  %v550_v36 = vld [vmem:[#allocation2 + $0x7b8] sm:$0xff] }
  0xd9   :  { %752 = vmatpush.msrb.mxu1 %v377_v52  ;;  %v305_v56 = vld [vmem:[#allocation2 + $0x10] sm:$0xff]  ;;  %769 = vmatpush.msrb.mxu2 %v453_v30  ;;  %v330_v37 = vld [vmem:[#allocation2 + $0xd8] sm:$0xff] }
  0xda   :  { %v529_v58 = vld [vmem:[#allocation2 + $0x710] sm:$0xff]  ;;  %733 = vmatpush.msrb.mxu0 %v309_v53  ;;  %v394_v38 = vld [vmem:[#allocation2 + $0x2d8] sm:$0xff] }
  0xdb   :  { %v369_v1 = vld [vmem:[#allocation2 + $0x210] sm:$0xff]  ;;  %753 = vmatpush.msrb.mxu1 %v373_v55  ;;  %770 = vmatpush.msrb.mxu2 %v449_v27  ;;  %v470_v39 = vld [vmem:[#allocation2 + $0x538] sm:$0xff] }
  0xdc   :  { %v445_v59 = vld [vmem:[#allocation2 + $0x470] sm:$0xff]  ;;  %734 = vmatpush.msrb.mxu0 %v305_v56  ;;  %786 = vmatpush.msrb.mxu3 %v529_v58  ;;  %v546_v40 = vld [vmem:[#allocation2 + $0x798] sm:$0xff] }
  0xdd   :  { %v525_v57 = vld [vmem:[#allocation2 + $0x6f0] sm:$0xff]  ;;  %754 = vmatpush.msrb.mxu1 %v369_v1  ;;  %771 = vmatpush.msrb.mxu2 %v445_v59  ;;  %v326_v42 = vld [vmem:[#allocation2 + $0xb8] sm:$0xff] }
  0xde   :  { %v521_v0 = vld [vmem:[#allocation2 + $0x6d0] sm:$0xff]  ;;  %735 = vmatmul.f32.vlgmr.msrb.gmra.mxu0 %v1488_v41  ;;  %787 = vmatpush.msrb.mxu3 %v525_v57  ;;  %v390_v44 = vld [vmem:[#allocation2 + $0x2b8] sm:$0xff] }
  0xdf   :  { %v441_v3 = vld [vmem:[#allocation2 + $0x450] sm:$0xff]  ;;  %755 = vmatmul.f32.vlgmr.msrb.gmra.mxu1 %v1490_v45  ;;  %799 = vmatpush.msra.mxu0 %v366_v60  ;;  %v466_v46 = vld [vmem:[#allocation2 + $0x518] sm:$0xff] }
  0xe0   :  { %v517_v24 = vld [vmem:[#allocation2 + $0x6b0] sm:$0xff]  ;;  %819 = vmatpush.msra.mxu1 %v430_v61  ;;  %788 = vmatpush.msrb.mxu3 %v521_v0  ;;  %v542_v48 = vld [vmem:[#allocation2 + $0x778] sm:$0xff] }
  0xe1   :  { %v437_v7 = vld [vmem:[#allocation2 + $0x430] sm:$0xff]  ;;  %772 = vmatpush.msrb.mxu2 %v441_v3  ;;  %800 = vmatpush.msra.mxu0 %v362_v4  ;;  %v322_v62 = vld [vmem:[#allocation2 + $0x98] sm:$0xff] }
  0xe2   :  { %v513_v10 = vld [vmem:[#allocation2 + $0x690] sm:$0xff]  ;;  %820 = vmatpush.msra.mxu1 %v426_v6  ;;  %789 = vmatpush.msrb.mxu3 %v517_v24  ;;  %v386_v50 = vld [vmem:[#allocation2 + $0x298] sm:$0xff] }
  0xe3   :  { %v433_v47 = vld [vmem:[#allocation2 + $0x410] sm:$0xff]  ;;  %773 = vmatpush.msrb.mxu2 %v437_v7  ;;  %801 = vmatpush.msra.mxu0 %v358_v8  ;;  %v462_v51 = vld [vmem:[#allocation2 + $0x4f8] sm:$0xff] }
  0xe4   :  { %v509_v11 = vld [vmem:[#allocation2 + $0x670] sm:$0xff]  ;;  %821 = vmatpush.msra.mxu1 %v422_v9  ;;  %790 = vmatpush.msrb.mxu3 %v513_v10  ;;  %v538_v63 = vld [vmem:[#allocation2 + $0x758] sm:$0xff] }
  0xe5   :  { %774 = vmatpush.msrb.mxu2 %v433_v47  ;;  %v505_v14 = vld [vmem:[#allocation2 + $0x650] sm:$0xff]  ;;  %802 = vmatpush.msra.mxu0 %v354_v2  ;;  %v318_v52 = vld [vmem:[#allocation2 + $0x78] sm:$0xff] }
  0xe6   :  { %775 = vmatmul.f32.vlgmr.msrb.gmra.mxu2 %v1500_v5  ;;  %791 = vmatpush.msrb.mxu3 %v509_v11  ;;  %v501_v18 = vld [vmem:[#allocation2 + $0x630] sm:$0xff]  ;;  %v382_v30 = vld [vmem:[#allocation2 + $0x278] sm:$0xff] }
  0xe7   :  { %822 = vmatpush.msra.mxu1 %v418_v12  ;;  %839 = vmatpush.msra.mxu2 %v494_v13  ;;  %v497_v15 = vld [vmem:[#allocation2 + $0x610] sm:$0xff]  ;;  %v458_v53 = vld [vmem:[#allocation2 + $0x4d8] sm:$0xff] }
  0xe8   :  { %803 = vmatpush.msra.mxu0 %v350_v16  ;;  %792 = vmatpush.msrb.mxu3 %v505_v14  ;;  %v534_v54 = vld [vmem:[#allocation2 + $0x738] sm:$0xff] }
  0xe9   :  { %823 = vmatpush.msra.mxu1 %v414_v49  ;;  %840 = vmatpush.msra.mxu2 %v490_v17  ;;  %v314_v55 = vld [vmem:[#allocation2 + $0x58] sm:$0xff]  ;;  %v1068_v49 = vld [vmem:[%s1805_s3 + $0x68] sm:$0xff] }
  0xea   :  { %804 = vmatpush.msra.mxu0 %v346_v33  ;;  %793 = vmatpush.msrb.mxu3 %v501_v18  ;;  %v378_v27 = vld [vmem:[#allocation2 + $0x258] sm:$0xff]  ;;  %v1067_v18 = vld [vmem:[%s1805_s3 + $0x60] sm:$0xff] }
  0xeb   :  { %824 = vmatpush.msra.mxu1 %v410_v20  ;;  %841 = vmatpush.msra.mxu2 %v486_v21  ;;  %v454_v56 = vld [vmem:[#allocation2 + $0x4b8] sm:$0xff] }
  0xec   :  { %805 = vmatpush.msra.mxu0 %v342_v19  ;;  %794 = vmatpush.msrb.mxu3 %v497_v15  ;;  %v530_v58 = vld [vmem:[#allocation2 + $0x718] sm:$0xff] }
  0xed   :  { %825 = vmatpush.msra.mxu1 %v406_v22  ;;  %795 = vmatmul.f32.vlgmr.msrb.gmra.mxu3 %v1508_v28  ;;  %v310_v1 = vld [vmem:[#allocation2 + $0x38] sm:$0xff] }
  0xee   :  { %842 = vmatpush.msra.mxu2 %v482_v23  ;;  %859 = vmatpush.msra.mxu3 %v558_v43  ;;  %v374_v59 = vld [vmem:[#allocation2 + $0x238] sm:$0xff]  ;;  %v1065_v43 = vld [vmem:[%s1805_s3 + $0x50] sm:$0xff] }
  0xef   :  { %806 = vmatpush.msra.mxu0 %v338_v29  ;;  %826 = vmatpush.msra.mxu1 %v402_v26  ;;  %v450_v57 = vld [vmem:[#allocation2 + $0x498] sm:$0xff]  ;;  %v1085_v29 = vld [vmem:[%s1805_s3 + $0xf0] sm:$0xff] }
  0xf0   :  { %843 = vmatpush.msra.mxu2 %v478_v31  ;;  %860 = vmatpush.msra.mxu3 %v554_v32  ;;  %v526_v60 = vld [vmem:[#allocation2 + $0x6f8] sm:$0xff]  ;;  %v1064_v32 = vld [vmem:[%s1805_s3 + $0x48] sm:$0xff] }
  0xf1   :  { %807 = vmatpush.msra.mxu0 %v334_v25  ;;  %827 = vmatpush.msra.mxu1 %v398_v34  ;;  %v306_v61 = vld [vmem:[#allocation2 + $0x18] sm:$0xff]  ;;  %v1084_v25 = vld [vmem:[%s1805_s3 + $0xe8] sm:$0xff] }
  0xf2   :  { %844 = vmatpush.msra.mxu2 %v474_v35  ;;  %861 = vmatpush.msra.mxu3 %v550_v36  ;;  %v370_v0 = vld [vmem:[#allocation2 + $0x218] sm:$0xff]  ;;  %v1063_v36 = vld [vmem:[%s1805_s3 + $0x40] sm:$0xff] }
  0xf3   :  { %808 = vmatpush.msra.mxu0 %v330_v37  ;;  %828 = vmatpush.msra.mxu1 %v394_v38  ;;  %v446_v3 = vld [vmem:[#allocation2 + $0x478] sm:$0xff]  ;;  %v1083_v37 = vld [vmem:[%s1805_s3 + $0xe0] sm:$0xff] }
  0xf4   :  { %845 = vmatpush.msra.mxu2 %v470_v39  ;;  %862 = vmatpush.msra.mxu3 %v546_v40  ;;  %v522_v4 = vld [vmem:[#allocation2 + $0x6d8] sm:$0xff] }
  0xf5   :  { %809 = vmatpush.msra.mxu0 %v326_v42  ;;  %829 = vmatpush.msra.mxu1 %v390_v44  ;;  %v442_v6 = vld [vmem:[#allocation2 + $0x458] sm:$0xff] }
  0xf6   :  { %846 = vmatpush.msra.mxu2 %v466_v46  ;;  %863 = vmatpush.msra.mxu3 %v542_v48  ;;  %v518_v24 = vld [vmem:[#allocation2 + $0x6b8] sm:$0xff] }
  0xf7   :  { %810 = vmatpush.msra.mxu0 %v322_v62  ;;  %830 = vmatpush.msra.mxu1 %v386_v50  ;;  %v438_v7 = vld [vmem:[#allocation2 + $0x438] sm:$0xff]  ;;  %v1061_v50 = vld [vmem:[%s1805_s3 + $0x30] sm:$0xff] }
  0xf8   :  { %847 = vmatpush.msra.mxu2 %v462_v51  ;;  %864 = vmatpush.msra.mxu3 %v538_v63  ;;  %v514_v8 = vld [vmem:[#allocation2 + $0x698] sm:$0xff]  ;;  %v1081_v51 = vld [vmem:[%s1805_s3 + $0xd0] sm:$0xff] }
  0xf9   :  { %811 = vmatpush.msra.mxu0 %v318_v52  ;;  %831 = vmatpush.msra.mxu1 %v382_v30  ;;  %v434_v9 = vld [vmem:[#allocation2 + $0x418] sm:$0xff] }
  0xfa   :  { %848 = vmatpush.msra.mxu2 %v458_v53  ;;  %865 = vmatpush.msra.mxu3 %v534_v54  ;;  %v510_v10 = vld [vmem:[#allocation2 + $0x678] sm:$0xff]  ;;  %v1060_v53 = vld [vmem:[%s1805_s3 + $0x28] sm:$0xff] }
  0xfb   :  { %812 = vmatpush.msra.mxu0 %v314_v55  ;;  %832 = vmatpush.msra.mxu1 %v378_v27  ;;  %v506_v47 = vld [vmem:[#allocation2 + $0x658] sm:$0xff]  ;;  %v1080_v54 = vld [vmem:[%s1805_s3 + $0xc8] sm:$0xff] }
  0xfc   :  { %849 = vmatpush.msra.mxu2 %v454_v56  ;;  %866 = vmatpush.msra.mxu3 %v530_v58  ;;  %v502_v2 = vld [vmem:[#allocation2 + $0x638] sm:$0xff]  ;;  %v1059_v58 = vld [vmem:[%s1805_s3 + $0x20] sm:$0xff] }
  0xfd   :  { %813 = vmatpush.msra.mxu0 %v310_v1  ;;  %833 = vmatpush.msra.mxu1 %v374_v59  ;;  %v498_v11 = vld [vmem:[#allocation2 + $0x618] sm:$0xff]  ;;  %v1079_v1 = vld [vmem:[%s1805_s3 + $0xc0] sm:$0xff] }
  0xfe   :  { %850 = vmatpush.msra.mxu2 %v450_v57  ;;  %867 = vmatpush.msra.mxu3 %v526_v60  ;;  %v1070_v13 = vld [vmem:[%s1805_s3 + $0x78] sm:$0xff] }
  0xff   :  { %814 = vmatpush.msra.mxu0 %v306_v61  ;;  %834 = vmatpush.msra.mxu1 %v370_v0  ;;  %v1066_v19 = vld [vmem:[%s1805_s3 + $0x58] sm:$0xff] }
 0x100   :  { %851 = vmatpush.msra.mxu2 %v446_v3  ;;  %868 = vmatpush.msra.mxu3 %v522_v4  ;;  %v1086_v15 = vld [vmem:[%s1805_s3 + $0xf8] sm:$0xff] }
 0x101   :  { %815 = vmatmul.f32.vlgmr.msra.gmra.mxu0 %v1488_v41  ;;  %835 = vmatmul.f32.vlgmr.msra.gmra.mxu1 %v1490_v45  ;;  %v1062_v42 = vld [vmem:[%s1805_s3 + $0x38] sm:$0xff] }
 0x102   :  { %852 = vmatpush.msra.mxu2 %v442_v6  ;;  %869 = vmatpush.msra.mxu3 %v518_v24  ;;  %v1082_v44 = vld [vmem:[%s1805_s3 + $0xd8] sm:$0xff] }
 0x103   :  { %1119 = vmatpush.msrb.mxu0 %v1070_v13  ;;  %1139 = vmatpush.msrb.mxu1 %v1086_v15  ;;  %v1058_v61 = vld [vmem:[%s1805_s3 + $0x18] sm:$0xff] }
 0x104   :  { %853 = vmatpush.msra.mxu2 %v438_v7  ;;  %870 = vmatpush.msra.mxu3 %v514_v8  ;;  %v1078_v0 = vld [vmem:[%s1805_s3 + $0xb8] sm:$0xff]  ;;  %v1057_v7 = vld [vmem:[%s1805_s3 + $0x10] sm:$0xff] }
 0x105   :  { %1140 = vmatpush.msrb.mxu1 %v1085_v29  ;;  %v1077_v8 = vld [vmem:[%s1805_s3 + $0xb0] sm:$0xff] }
 0x106   :  { %854 = vmatpush.msra.mxu2 %v434_v9  ;;  %871 = vmatpush.msra.mxu3 %v510_v10 }
 0x107   :  { %855 = vmatmul.f32.vlgmr.msra.gmra.mxu2 %v1500_v5  ;;  %v1069_v5 = vld [vmem:[%s1805_s3 + $0x70] sm:$0xff]  ;;  %1141 = vmatpush.msrb.mxu1 %v1084_v25  ;;  %v1100_v25 = vld [vmem:[%s1805_s3 + $0x168] sm:$0xff] }
 0x108   :  { %872 = vmatpush.msra.mxu3 %v506_v47  ;;  %1120 = vmatpush.msrb.mxu0 %v1069_v5  ;;  %v1055_v5 = vld [vmem:[%s1805_s3] sm:$0xff] }
 0x109   :  { %1142 = vmatpush.msrb.mxu1 %v1083_v37  ;;  %v1099_v37 = vld [vmem:[%s1805_s3 + $0x160] sm:$0xff] }
 0x10a   :  { %873 = vmatpush.msra.mxu3 %v502_v2  ;;  %1121 = vmatpush.msrb.mxu0 %v1068_v49  ;;  %v1056_v2 = vld [vmem:[%s1805_s3 + $0x8] sm:$0xff] }
 0x10b   :  { %1143 = vmatpush.msrb.mxu1 %v1082_v44  ;;  %v1071_v44 = vld [vmem:[%s1805_s3 + $0x80] sm:$0xff] }
 0x10c   :  { %874 = vmatpush.msra.mxu3 %v498_v11  ;;  %1122 = vmatpush.msrb.mxu0 %v1067_v18  ;;  %v1076_v11 = vld [vmem:[%s1805_s3 + $0xa8] sm:$0xff] }
 0x10d   :  { %875 = vmatmul.f32.vlgmr.msra.gmra.mxu3 %v1508_v28  ;;  %1144 = vmatpush.msrb.mxu1 %v1081_v51 }
 0x10e   :  { %1123 = vmatpush.msrb.mxu0 %v1066_v19 }
 0x10f   :  { %1145 = vmatpush.msrb.mxu1 %v1080_v54 }
 0x110   :  { %1124 = vmatpush.msrb.mxu0 %v1065_v43 }
 0x111   :  { %1146 = vmatpush.msrb.mxu1 %v1079_v1  ;;  %v1096_v1 = vld [vmem:[%s1805_s3 + $0x148] sm:$0xff] }
 0x112   :  { %1125 = vmatpush.msrb.mxu0 %v1064_v32 }
 0x113   :  { %1147 = vmatpush.msrb.mxu1 %v1078_v0 }
 0x114   :  { %1126 = vmatpush.msrb.mxu0 %v1063_v36  ;;  %v1072_v36 = vld [vmem:[%s1805_s3 + $0x88] sm:$0xff] }
 0x115   :  { %1148 = vmatpush.msrb.mxu1 %v1077_v8  ;;  %v1094_v8 = vld [vmem:[%s1805_s3 + $0x138] sm:$0xff] }
 0x116   :  { %1127 = vmatpush.msrb.mxu0 %v1062_v42 }
 0x117   :  { %1149 = vmatpush.msrb.mxu1 %v1076_v11 }
 0x118   :  { %1128 = vmatpush.msrb.mxu0 %v1061_v50  ;;  %v1098_v50 = vld [vmem:[%s1805_s3 + $0x158] sm:$0xff] }
 0x11a   :  { %1129 = vmatpush.msrb.mxu0 %v1060_v53 }
 0x11c   :  { %1130 = vmatpush.msrb.mxu0 %v1059_v58 }
 0x11e   :  { %1131 = vmatpush.msrb.mxu0 %v1058_v61 }
 0x120   :  { %1132 = vmatpush.msrb.mxu0 %v1057_v7 }
 0x122   :  { %1133 = vmatpush.msrb.mxu0 %v1056_v2  ;;  %v1093_v2 = vld [vmem:[%s1805_s3 + $0x130] sm:$0xff] }
 0x124   :  { %1134 = vmatpush.msrb.mxu0 %v1055_v5 }
 0x139   :  { %v576_v41 = vpop.f32.mrf.mxu0 }
 0x13a   :  { %v596_v45 = vpop.f32.mrf.mxu1 }
 0x13b   :  { %v597_v16 = vadd.f32 %v596_v45, %v576_v41 }
 0x141   :  { %v656_v28 = vpop.f32.mrf.mxu0 }
 0x142   :  { %v676_v17 = vpop.f32.mrf.mxu1 }
 0x143   :  { %v677_v22 = vadd.f32 %v676_v17, %v656_v28  ;;  %v1102_v17 = vld [vmem:[%s1805_s3 + $0x178] sm:$0xff] }
 0x144   :  { %1159 = vmatpush.msrb.mxu2 %v1102_v17 }
 0x146   :  { %v616_v12 = vpop.f32.mrf.mxu2 }
 0x147   :  { %v617_v14 = vadd.f32 %v616_v12, %v597_v16 }
 0x14a   :  { %v636_v33 = vpop.f32.mrf.mxu3 }
 0x14b   :  { %v1533_v20 = vadd.f32 %v636_v33, %v617_v14  ;;  %v1075_v14 = vld [vmem:[%s1805_s3 + $0xa0] sm:$0xff] }
 0x14c   :  { %1150 = vmatpush.msrb.mxu1 %v1075_v14  ;;  %v1092_v14 = vld [vmem:[%s1805_s3 + $0x128] sm:$0xff] }
 0x14d   :  { %v1542_v23 = vmul.f32 0.70710677, %v1533_v20 }
 0x14f   :  { %v696_v21 = vpop.f32.mrf.mxu2  ;;  %v887_v26 = vmul.f32 %v1542_v23, %v1542_v23 }
 0x150   :  { %v697_v31 = vadd.f32 %v696_v21, %v677_v22  ;;  %v1074_v21 = vld [vmem:[%s1805_s3 + $0x98] sm:$0xff]  ;;  %v1101_v22 = vld [vmem:[%s1805_s3 + $0x170] sm:$0xff] }
 0x151   :  { %v1558_v34 = vmin.f32 %v887_v26, 16.0  ;;  %1151 = vmatpush.msrb.mxu1 %v1074_v21  ;;  %1160 = vmatpush.msrb.mxu2 %v1101_v22  ;;  %v1073_v26 = vld [vmem:[%s1805_s3 + $0x90] sm:$0xff] }
 0x153   :  { %v889_v38 = vmul.f32 2.1237322e-06, %v1558_v34  ;;  %v900_v39 = vmul.f32 3.8918573e-05, %v1558_v34  ;;  %1152 = vmatpush.msrb.mxu1 %v1073_v26  ;;  %1161 = vmatpush.msrb.mxu2 %v1100_v25  ;;  %v1089_v25 = vld [vmem:[%s1805_s3 + $0x110] sm:$0xff] }
 0x155   :  { %v716_v35 = vpop.f32.mrf.mxu3  ;;  %v890_v46 = vadd.f32 0.00028619796, %v889_v38  ;;  %v901_v48 = vadd.f32 0.001143296, %v900_v39  ;;  %1153 = vmatpush.msrb.mxu1 %v1072_v36  ;;  %1162 = vmatpush.msrb.mxu2 %v1099_v37 }
 0x156   :  { %v1568_v40 = vadd.f32 %v716_v35, %v697_v31 }
 0x157   :  { %v891_v63 = vmul.f32 %v890_v46, %v1558_v34  ;;  %v902_v52 = vmul.f32 %v901_v48, %v1558_v34  ;;  %1154 = vmatpush.msrb.mxu1 %v1071_v44  ;;  %1163 = vmatpush.msrb.mxu2 %v1098_v50 }
 0x158   :  { %v1577_v62 = vmul.f32 0.70710677, %v1568_v40 }
 0x159   :  { %v903_v55 = vadd.f32 0.014752088, %v902_v52  ;;  %v892_v27 = vadd.f32 0.0036580483, %v891_v63 }
 0x15a   :  { %v927_v30 = vmul.f32 %v1577_v62, %v1577_v62 }
 0x15b   :  { %v904_v59 = vmul.f32 %v903_v55, %v1558_v34  ;;  %v893_v4 = vmul.f32 %v892_v27, %v1558_v34  ;;  %v736_v13 = vpop.f32.mrf.mxu0 }
 0x15c   :  { %v1595_v56 = vmin.f32 %v927_v30, 16.0  ;;  %v756_v16 = vpop.f32.mrf.mxu1  ;;  %v1097_v30 = vld [vmem:[%s1805_s3 + $0x150] sm:$0xff] }
 0x15d   :  { %v905_v3 = vadd.f32 0.112945676, %v904_v59  ;;  %v894_v45 = vadd.f32 0.05243302, %v893_v4  ;;  %v757_v15 = vadd.f32 %v756_v16, %v736_v13  ;;  %1164 = vmatpush.msrb.mxu2 %v1097_v30 }
 0x15e   :  { %v929_v57 = vmul.f32 2.1237322e-06, %v1595_v56  ;;  %v940_v60 = vmul.f32 3.8918573e-05, %v1595_v56 }
 0x15f   :  { %v906_v9 = vmul.f32 %v905_v3, %v1558_v34  ;;  %v895_v43 = vmul.f32 %v894_v45, %v1558_v34  ;;  %1165 = vmatpush.msrb.mxu2 %v1096_v1  ;;  %v1117_v1 = vld [vmem:[%s1805_s3 + $0x1f0] sm:$0xff] }
 0x160   :  { %v930_v6 = vadd.f32 0.00028619796, %v929_v57  ;;  %v941_v24 = vadd.f32 0.001143296, %v940_v60  ;;  %v1095_v60 = vld [vmem:[%s1805_s3 + $0x140] sm:$0xff] }
 0x161   :  { %v907_v41 = vadd.f32 0.4994258, %v906_v9  ;;  %v896_v38 = vadd.f32 0.18741608, %v895_v43  ;;  %1166 = vmatpush.msrb.mxu2 %v1095_v60  ;;  %v1090_v43 = vld [vmem:[%s1805_s3 + $0x118] sm:$0xff] }
 0x162   :  { %v931_v10 = vmul.f32 %v930_v6, %v1595_v56  ;;  %v942_v47 = vmul.f32 %v941_v24, %v1595_v56 }
 0x163   :  { %v908_v49 = vmul.f32 %v907_v41, %v1558_v34  ;;  %v897_v53 = vmul.f32 %v896_v38, %v1558_v34  ;;  %1167 = vmatpush.msrb.mxu2 %v1094_v8  ;;  %v1114_v8 = vld [vmem:[%s1805_s3 + $0x1d8] sm:$0xff] }
 0x164   :  { %v943_v12 = vadd.f32 0.014752088, %v942_v47  ;;  %v932_v28 = vadd.f32 0.0036580483, %v931_v10 }
 0x165   :  { %v1642_v19 = vadd.f32 1.0, %v908_v49  ;;  %v898_v61 = vadd.f32 1.1283791, %v897_v53  ;;  %1168 = vmatpush.msrb.mxu2 %v1093_v2 }
 0x166   :  { %v944_v33 = vmul.f32 %v943_v12, %v1595_v56  ;;  %v933_v31 = vmul.f32 %v932_v28, %v1595_v56 }
 0x167   :  { %1242 = vrcp.f32 %v1642_v19  ;;  %v921_v34 = vand.u32 2147483648, %v1642_v19  ;;  %v919_v3 = vand.u32 2147483647, %v1642_v19  ;;  %vm915_vm2 = vweird.f32 %v1642_v19  ;;  %1169 = vmatpush.msrb.mxu2 %v1092_v14 }
 0x168   :  { %v945_v29 = vadd.f32 0.112945676, %v944_v33  ;;  %v934_v46 = vadd.f32 0.05243302, %v933_v31  ;;  %v899_v41 = vmul.f32 %v898_v61, %v1542_v23  ;;  %v1091_v23 = vld [vmem:[%s1805_s3 + $0x120] sm:$0xff] }
 0x169   :  { %v776_v18 = vpop.f32.mrf.mxu2  ;;  %v922_v9 = vor.u32 1.1754944e-38, %v921_v34  ;;  %vm920_vm4 = vcmp.eq.f32.partialorder %v919_v3, 8.507059e+37  ;;  %1170 = vmatpush.msrb.mxu2 %v1091_v23  ;;  %v1116_v3 = vld [vmem:[%s1805_s3 + $0x1e8] sm:$0xff] }
 0x16a   :  { %v777_v32 = vadd.f32 %v776_v18, %v757_v15  ;;  %v946_v35 = vmul.f32 %v945_v29, %v1595_v56  ;;  %v935_v27 = vmul.f32 %v934_v46, %v1595_v56  ;;  %v879_v29 = vmul.f32 0.5, %v1533_v20 }
 0x16b   :  { %1171 = vmatpush.msrb.mxu2 %v1090_v43  ;;  %v1108_v43 = vld [vmem:[%s1805_s3 + $0x1a8] sm:$0xff] }
 0x16c   :  { %v947_v39 = vadd.f32 0.4994258, %v946_v35  ;;  %v936_v4 = vadd.f32 0.18741608, %v935_v27 }
 0x16d   :  { %v1243_v63 = vpop.eup %1242  ;;  %1172 = vmatpush.msrb.mxu2 %v1089_v25  ;;  %v1107_v25 = vld [vmem:[%s1805_s3 + $0x1a0] sm:$0xff] }
 0x16e   :  { %v948_v51 = vmul.f32 %v947_v39, %v1595_v56  ;;  %v911_v54 = vmul.f32 %v1243_v63, %v1642_v19  ;;  %vm916_vm1 = vweird.f32 %v1243_v63  ;;  %v937_v13 = vmul.f32 %v936_v4, %v1595_v56 }
 0x16f   :  { %vm917_vm3 = vmor %vm915_vm2, %vm916_vm1  ;;  %vm1199_vm1 = vcmask 254976  }
 0x170   :  { %v796_v42 = vpop.f32.mrf.mxu3  ;;  %v1680_v55 = vadd.f32 1.0, %v948_v51  ;;  %v912_v59 = vsub.f32 1.0, %v911_v54  ;;  %v938_v19 = vadd.f32 1.1283791, %v937_v13  ;;  %v1087_v51 = vld [vmem:[%s1805_s3 + $0x100] sm:$0xff]  ;;  %v1118_v54 = vld [vmem:[%s1805_s3 + $0x1f8] sm:$0xff] }
 0x171   :  { %v1666_v48 = vadd.f32 %v796_v42, %v777_v32  ;;  %v1088_v42 = vld [vmem:[%s1805_s3 + $0x108] sm:$0xff]  ;;  %1179 = vmatpush.msrb.mxu3 %v1118_v54  ;;  %v1111_v13 = vld [vmem:[%s1805_s3 + $0x1c0] sm:$0xff] }
 0x172   :  { %1244 = vrcp.f32 %v1680_v55  ;;  %v913_v0 = vmul.f32 %v1243_v63, %v912_v59  ;;  %v961_v56 = vand.u32 2147483648, %v1680_v55  ;;  %v959_v22 = vand.u32 2147483647, %v1680_v55  ;;  %1173 = vmatpush.msrb.mxu2 %v1088_v42 }
 0x173   :  { %v1673_v52 = vmul.f32 0.70710677, %v1666_v48  ;;  %vm955_vm6 = vweird.f32 %v1680_v55  ;;  %v939_v39 = vmul.f32 %v938_v19, %v1577_v62  ;;  %v880_v59 = vmul.f32 0.5, %v1568_v40  ;;  %1180 = vmatpush.msrb.mxu3 %v1117_v1 }
 0x174   :  { %v914_v7 = vadd.f32 %v1243_v63, %v913_v0  ;;  %v962_v36 = vor.u32 1.1754944e-38, %v961_v56  ;;  %vm960_vm8 = vcmp.eq.f32.partialorder %v959_v22, 8.507059e+37  ;;  %1174 = vmatpush.msrb.mxu2 %v1087_v51  ;;  %v1109_v56 = vld [vmem:[%s1805_s3 + $0x1b0] sm:$0xff]  ;;  %v881_v42 = vmul.f32 0.5, %v1666_v48  ;;  %v1104_v51 = vld [vmem:[%s1805_s3 + $0x188] sm:$0xff] }
 0x175   :  { %v967_v58 = vmul.f32 %v1673_v52, %v1673_v52  ;;  %1181 = vmatpush.msrb.mxu3 %v1116_v3 }
 0x176   :  { %v918_v45 = vsel %vm917_vm3, %v1243_v63, %v914_v7 }
 0x177   :  { %v1690_v57 = vmin.f32 %v967_v58, 16.0  ;;  %v923_v12 = vsel %vm920_vm4, %v922_v9, %v918_v45 }
 0x178   :  { %v1245_v11 = vpop.eup %1244  ;;  %v924_v49 = vmul.f32 %v923_v12, %v899_v41  ;;  %v1112_v41 = vld [vmem:[%s1805_s3 + $0x1c8] sm:$0xff] }
 0x179   :  { %v969_v6 = vmul.f32 2.1237322e-06, %v1690_v57  ;;  %v980_v24 = vmul.f32 3.8918573e-05, %v1690_v57  ;;  %v951_v16 = vmul.f32 %v1245_v11, %v1680_v55  ;;  %vm956_vm5 = vweird.f32 %v1245_v11 }
 0x17a   :  { %v1226_v33 = vclamps-f32 %v924_v49, 1.0  ;;  %vm957_vm7 = vmor %vm955_vm6, %vm956_vm5 }
 0x17b   :  { %v970_v10 = vadd.f32 0.00028619796, %v969_v6  ;;  %v981_v47 = vadd.f32 0.001143296, %v980_v24  ;;  %v952_v17 = vsub.f32 1.0, %v951_v16  ;;  %v1115_v24 = vld [vmem:[%s1805_s3 + $0x1e0] sm:$0xff] }
 0x17c   :  { %v1047_v26 = vadd.f32 1.0, %v1226_v33  ;;  %1182 = vmatpush.msrb.mxu3 %v1115_v24 }
 0x17d   :  { %v971_v5 = vmul.f32 %v970_v10, %v1690_v57  ;;  %v982_v28 = vmul.f32 %v981_v47, %v1690_v57  ;;  %v953_v15 = vmul.f32 %v1245_v11, %v952_v17  ;;  %v1113_v10 = vld [vmem:[%s1805_s3 + $0x1d0] sm:$0xff] }
 0x17e   :  { %v1051_v35 = vmul.f32 %v1047_v26, %v879_v29  ;;  %v816_v62 = vpop.f32.mrf.mxu0  ;;  %v836_v53 = vpop.f32.mrf.mxu1  ;;  %1183 = vmatpush.msrb.mxu3 %v1114_v8 }
 0x17f   :  { %v972_v18 = vadd.f32 0.0036580483, %v971_v5  ;;  %v983_v21 = vadd.f32 0.014752088, %v982_v28  ;;  %v954_v32 = vadd.f32 %v1245_v11, %v953_v15  ;;  %v837_v60 = vadd.f32 %v836_v53, %v816_v62 }
 0x180   :  { %1135 = vmatmul.f32.vlgmr.msrb.gmra.mxu0 %v1051_v35  ;;  %1184 = vmatpush.msrb.mxu3 %v1113_v10 }
 0x181   :  { %v984_v31 = vmul.f32 %v983_v21, %v1690_v57  ;;  %v973_v37 = vmul.f32 %v972_v18, %v1690_v57  ;;  %v958_v20 = vsel %vm957_vm7, %v1245_v11, %v954_v32 }
 0x182   :  { %v963_v44 = vsel %vm960_vm8, %v962_v36, %v958_v20  ;;  %1185 = vmatpush.msrb.mxu3 %v1112_v41  ;;  %v1105_v20 = vld [vmem:[%s1805_s3 + $0x190] sm:$0xff] }
 0x183   :  { %v985_v38 = vadd.f32 0.112945676, %v984_v31  ;;  %v964_v50 = vmul.f32 %v963_v44, %v939_v39  ;;  %v974_v63 = vadd.f32 0.05243302, %v973_v37  ;;  %v1106_v37 = vld [vmem:[%s1805_s3 + $0x198] sm:$0xff] }
 0x184   :  { %1186 = vmatpush.msrb.mxu3 %v1111_v13 }
 0x185   :  { %v986_v46 = vmul.f32 %v985_v38, %v1690_v57  ;;  %v1227_v55 = vclamps-f32 %v964_v50, 1.0  ;;  %v975_v61 = vmul.f32 %v974_v63, %v1690_v57  ;;  %v1103_v63 = vld [vmem:[%s1805_s3 + $0x180] sm:$0xff] }
 0x187   :  { %v987_v30 = vadd.f32 0.4994258, %v986_v46  ;;  %v1048_v34 = vadd.f32 1.0, %v1227_v55  ;;  %v976_v40 = vadd.f32 0.18741608, %v975_v61 }
 0x189   :  { %v988_v27 = vmul.f32 %v987_v30, %v1690_v57  ;;  %v1052_v4 = vmul.f32 %v1048_v34, %v880_v59  ;;  %v977_v11 = vmul.f32 %v976_v40, %v1690_v57  ;;  %v1110_v57 = vld [vmem:[%s1805_s3 + $0x1b8] sm:$0xff]  ;;  %s1305_s3 = smov [#allocation5]  }
 0x18a   :  { %v856_v58 = vpop.f32.mrf.mxu2  ;;  %1187 = vmatpush.msrb.mxu3 %v1110_v57  ;;  %s1206_s23 = sshll.u32 %s1305_s3, 4  ;;  %s1207_s23 = int_to_ptr.vmem [resolvable:$true] %s1206_s23 }
 0x18b   :  { %v989_v0 = vadd.f32 1.0, %v988_v27  ;;  %v857_v6 = vadd.f32 %v856_v58, %v837_v60  ;;  %1155 = vmatmul.f32.vlgmr.msrb.gmra.mxu1 %v1052_v4  ;;  %v978_v14 = vadd.f32 1.1283791, %v977_v11 }
 0x18c   :  { %1188 = vmatpush.msrb.mxu3 %v1109_v56 }
 0x18d   :  { %1246 = vrcp.f32 %v989_v0  ;;  %v999_v49 = vand.u32 2147483647, %v989_v0  ;;  %v1001_v28 = vand.u32 2147483648, %v989_v0  ;;  %vm995_vm10 = vweird.f32 %v989_v0 }
 0x18e   :  { %v979_v15 = vmul.f32 %v978_v14, %v1673_v52  ;;  %1189 = vmatpush.msrb.mxu3 %v1108_v43 }
 0x18f   :  { %v1002_v22 = vor.u32 1.1754944e-38, %v1001_v28  ;;  %vm1000_vm12 = vcmp.eq.f32.partialorder %v999_v49, 8.507059e+37 }
 0x190   :  { %v876_v7 = vpop.f32.mrf.mxu3  ;;  %1190 = vmatpush.msrb.mxu3 %v1107_v25 }
 0x191   :  { %v1754_v9 = vadd.f32 %v876_v7, %v857_v6 }
 0x192   :  { %1191 = vmatpush.msrb.mxu3 %v1106_v37 }
 0x193   :  { %v1760_v47 = vmul.f32 0.70710677, %v1754_v9  ;;  %v1247_v2 = vpop.eup %1246  ;;  %v882_v11 = vmul.f32 0.5, %v1754_v9 }
 0x194   :  { %v991_v45 = vmul.f32 %v1247_v2, %v989_v0  ;;  %vm996_vm9 = vweird.f32 %v1247_v2  ;;  %1192 = vmatpush.msrb.mxu3 %v1105_v20 }
 0x195   :  { %v1007_v12 = vmul.f32 %v1760_v47, %v1760_v47  ;;  %vm997_vm11 = vmor %vm995_vm10, %vm996_vm9 }
 0x196   :  { %v992_v16 = vsub.f32 1.0, %v991_v45  ;;  %1193 = vmatpush.msrb.mxu3 %v1104_v51 }
 0x197   :  { %v1008_v5 = vmin.f32 %v1007_v12, 16.0 }
 0x198   :  { %v993_v17 = vmul.f32 %v1247_v2, %v992_v16  ;;  %1194 = vmatpush.msrb.mxu3 %v1103_v63 }
 0x199   :  { %v1009_v23 = vmul.f32 2.1237322e-06, %v1008_v5  ;;  %v1020_v33 = vmul.f32 3.8918573e-05, %v1008_v5 }
 0x19a   :  { %v994_v18 = vadd.f32 %v1247_v2, %v993_v17 }
 0x19b   :  { %v1010_v21 = vadd.f32 0.00028619796, %v1009_v23  ;;  %v1021_v19 = vadd.f32 0.001143296, %v1020_v33 }
 0x19c   :  { %v998_v29 = vsel %vm997_vm11, %v1247_v2, %v994_v18 }
 0x19d   :  { %v1011_v26 = vmul.f32 %v1010_v21, %v1008_v5  ;;  %v1022_v31 = vmul.f32 %v1021_v19, %v1008_v5  ;;  %v1003_v32 = vsel %vm1000_vm12, %v1002_v22, %v998_v29 }
 0x19e   :  { %v1004_v35 = vmul.f32 %v1003_v32, %v979_v15 }
 0x19f   :  { %v1023_v36 = vadd.f32 0.014752088, %v1022_v31  ;;  %v1012_v52 = vadd.f32 0.0036580483, %v1011_v26 }
 0x1a0   :  { %v1228_v38 = vclamps-f32 %v1004_v35, 1.0 }
 0x1a1   :  { %v1024_v39 = vmul.f32 %v1023_v36, %v1008_v5  ;;  %v1013_v50 = vmul.f32 %v1012_v52, %v1008_v5 }
 0x1a2   :  { %v1049_v44 = vadd.f32 1.0, %v1228_v38 }
 0x1a3   :  { %v1025_v46 = vadd.f32 0.112945676, %v1024_v39  ;;  %v1014_v54 = vadd.f32 0.05243302, %v1013_v50 }
 0x1a4   :  { %v1053_v30 = vmul.f32 %v1049_v44, %v881_v42 }
 0x1a5   :  { %v1026_v62 = vmul.f32 %v1025_v46, %v1008_v5  ;;  %v1015_v27 = vmul.f32 %v1014_v54, %v1008_v5 }
 0x1a6   :  { %1175 = vmatmul.f32.vlgmr.msrb.gmra.mxu2 %v1053_v30 }
 0x1a7   :  { %v1027_v53 = vadd.f32 0.4994258, %v1026_v62  ;;  %v1016_v58 = vadd.f32 0.18741608, %v1015_v27 }
 0x1a9   :  { %v1028_v48 = vmul.f32 %v1027_v53, %v1008_v5  ;;  %v1017_v59 = vmul.f32 %v1016_v58, %v1008_v5 }
 0x1ab   :  { %v1029_v55 = vadd.f32 1.0, %v1028_v48  ;;  %v1018_v0 = vadd.f32 1.1283791, %v1017_v59 }
 0x1ad   :  { %1248 = vrcp.f32 %v1029_v55  ;;  %v1041_v61 = vand.u32 2147483648, %v1029_v55  ;;  %v1039_v4 = vand.u32 2147483647, %v1029_v55  ;;  %vm1035_vm14 = vweird.f32 %v1029_v55 }
 0x1ae   :  { %v1019_v40 = vmul.f32 %v1018_v0, %v1760_v47 }
 0x1af   :  { %v1042_v24 = vor.u32 1.1754944e-38, %v1041_v61  ;;  %vm1040_vm0 = vcmp.eq.f32.partialorder %v1039_v4, 8.507059e+37 }
 0x1b3   :  { %v1249_v1 = vpop.eup %1248 }
 0x1b4   :  { %v1031_v34 = vmul.f32 %v1249_v1, %v1029_v55  ;;  %vm1036_vm13 = vweird.f32 %v1249_v1 }
 0x1b5   :  { %vm1037_vm15 = vmor %vm1035_vm14, %vm1036_vm13 }
 0x1b6   :  { %v1032_v60 = vsub.f32 1.0, %v1031_v34 }
 0x1b8   :  { %v1033_v3 = vmul.f32 %v1249_v1, %v1032_v60 }
 0x1ba   :  { %v1034_v6 = vadd.f32 %v1249_v1, %v1033_v3 }
 0x1bc   :  { %v1038_v7 = vsel %vm1037_vm15, %v1249_v1, %v1034_v6 }
 0x1bd   :  { %v1043_v8 = vsel %vm1040_vm0, %v1042_v24, %v1038_v7 }
 0x1be   :  { %v1044_v10 = vmul.f32 %v1043_v8, %v1019_v40 }
 0x1c0   :  { %v1229_v2 = vclamps-f32 %v1044_v10, 1.0 }
 0x1c2   :  { %v1050_v41 = vadd.f32 1.0, %v1229_v2 }
 0x1c4   :  { %v1054_v45 = vmul.f32 %v1050_v41, %v882_v11 }
 0x1c6   :  { %1195 = vmatmul.f32.vlgmr.msrb.gmra.mxu3 %v1054_v45 }
 0x1fd   :  { %v1136_v13 = vpop.f32.mrf.mxu0 }
 0x208   :  { %v1156_v12 = vpop.f32.mrf.mxu1 }
 0x209   :  { %v1157_v5 = vadd.f32 %v1156_v12, %v1136_v13 }
 0x229   :  { %v1176_v16 = vpop.f32.mrf.mxu2 }
 0x22a   :  { %v1177_v47 = vadd.f32 %v1176_v16, %v1157_v5 }
 0x249   :  { %v1196_v14 = vpop.f32.mrf.mxu3 }
 0x24a   :  { %v1197_v49 = vadd.f32 %v1196_v14, %v1177_v47 }
 0x24c   :  { %1200 = vst.msk [vmem:[#allocation5] sm:$0x3] %vm1199_vm1, %v1197_v49 }
 0x24d   :  { %1211 = dma.vmem_to_hbm [thread:$0]  %s1207_s23, 32, %s1209_s26, [#allocation4]  }
 0x24e   :  { %1300 = dma.done.wait [#allocation4], 32  }
 0x24f   :  { %1301 = vsyncadd [#allocation4], 4294967264 }
 0x250   :  { %1216 = vsyncpa [#allocation3], 1 }
 0x251   :  { %1217 = vsyncpa [#allocation4], 1 }

</bundles_post_ra>
